<compile_context>
chip_gen: v5e
topology: v5e:2x2
jax: 0.10.0
libtpu: 0.0.40
codegen_flags: <defaults>
</compile_context>

<pallas_src>
import numpy as np

import jax
import jax.numpy as jnp
from jax.experimental import pallas as pl
from jax.experimental.pallas import tpu as pltpu


def _round_up(x, m):
    return (x + m - 1) // m * m


def _fold_upconv_weights(weight, k, o_pad, c_pad):
    """(O, C, k, k) conv weight -> (2*O_pad, n_shift*k*C_pad) fused row-phase weights.

    Output row phase py (rows 2i+py of the upsampled output) sees the
    column-upsampled image through n_shift distinct row shifts; G[py, ry, dy]
    folds the k row taps onto those shifts (summing taps that alias onto the
    same original row after nearest-2x upsampling).  Columns stay at full (2W)
    resolution, so the column taps are the raw k column offsets.
    """
    oc, c, kh, kw = weight.shape
    assert kh == k and kw == k
    p = k // 2
    pad_lo = -((0 - p) // 2)                  # rows of zero pad above
    pad_hi = (1 + (k - 1) - p) // 2           # rows of zero pad below
    n_shift = pad_lo + pad_hi + 1
    g = np.zeros((2, n_shift, k), dtype=np.float32)
    for ph in range(2):
        for d in range(k):
            g[ph, pad_lo + (ph + d - p) // 2, d] = 1.0
    gj = jnp.asarray(g, dtype=weight.dtype)
    # wf[py, o, ry, dx, c] = sum_dy G[py, ry, dy] * w[o, c, dy, dx]
    wf = jnp.einsum("prd,ocde->porec", gj, weight)
    wf = jnp.pad(wf, ((0, 0), (0, o_pad - oc), (0, 0), (0, 0), (0, c_pad - c)))
    return wf.reshape(2 * o_pad, n_shift * k * c_pad), pad_lo, pad_hi, n_shift


def _pick_block_h(h, two_w, block_h, target_lanes):
    """Output-row tile: divides H, TH*2W a multiple of 128 lanes (lane-dense
    stores + 128-aligned pixel offsets), as large as the lane budget allows."""
    if block_h is not None:
        th = max(1, min(int(block_h), h))
        while h % th:
            th -= 1
        if th == h or (th * two_w) % 128 == 0:
            return th
        # requested tile would violate the (8,128) block rule -> fall through
    divs = [d for d in range(1, h + 1) if h % d == 0]
    aligned = [d for d in divs if (d * two_w) % 128 == 0]
    if not aligned:
        return h                      # full-extent block is always legal
    under = [d for d in aligned if d * two_w <= target_lanes]
    cand = under if under else [min(aligned)]
    pref = [d for d in cand if d % 8 == 0]
    return max(pref if pref else cand)


def _make_kernel(c_pad, k, n_shift, two_w, th, sub_hint):
    pl_lanes = th * two_w

    def kernel(x_ref, w_ref, o_ref, taps_ref):
        # x_ref   : (C_pad, Hp, 2W+2p)   padded, column-upsampled image (resident)
        # w_ref   : (2*O_pad, K)         fused row-phase weights (resident)
        # o_ref   : (2*O_pad, TH*2W)     output block for this (batch, row-tile)
        # taps_ref: (K, TH*2W)           VMEM tap-stack scratch
        rt = pl.program_id(1)
        r0 = rt * th
        if sub_hint > 1:
            r0 = pl.multiple_of(r0, sub_hint)   # sublane-aligned dynamic row start
        # Build the tap stack directly into VMEM scratch: each (ry, dx) slice is
        # consumed (stored) immediately, so live ranges stay bounded and no
        # concatenate / dict of live slices is materialized.
        for ry in range(n_shift):
            for dx in range(k):
                idx = ry * k + dx
                sl = x_ref[:, pl.ds(r0 + ry, th), pl.ds(dx, two_w)]  # (C_pad, TH, 2W)
                taps_ref[pl.ds(idx * c_pad, c_pad), :] = sl.reshape(c_pad, pl_lanes)
        # One fused MXU matmul covering both row phases and all taps.
        o_ref[...] = jnp.dot(
            w_ref[...], taps_ref[...],
            preferred_element_type=jnp.float32).astype(o_ref.dtype)

    return kernel


def upconv(x_nchw, weight, k=3, *, block_h=None, compute_dtype=jnp.bfloat16):
    """Forward of UpConv: F.interpolate(scale_factor=2, mode='nearest') ->
    Conv2d(k, stride=1, padding=k//2, bias=False).

    x_nchw: (N, C, H, W); weight: (O, C, k, k) PyTorch layout.  Returns
    (N, O, 2H, 2W).  Requires odd k (for even k PyTorch's padding=k//2 changes
    the output size).
    """
    n, c, h, w = x_nchw.shape
    oc = weight.shape[0]
    assert weight.shape == (oc, c, k, k), weight.shape
    assert k % 2 == 1, "upconv Pallas kernel requires odd k"

    itemsize = jnp.dtype(compute_dtype).itemsize
    out_dtype = x_nchw.dtype
    out_itemsize = jnp.dtype(out_dtype).itemsize
    sub = 8 if itemsize >= 4 else 16
    c_pad = max(_round_up(c, sub), sub)           # aligned tap copies (sublane tile)
    o_pad = max(_round_up(oc, 8), 8)              # aligned output rows
    p = k // 2
    two_w = 2 * w

    wf, pad_lo, pad_hi, n_shift = _fold_upconv_weights(weight, k, o_pad, c_pad)
    wf = wf.astype(compute_dtype)
    kdim = wf.shape[1]
    hp = h + pad_lo + pad_hi
    wcp = two_w + 2 * p

    # Glue (cheap, input-sized): nearest column-upsample + channel/spatial zero
    # pad of the NCHW input.  No full 2x upsample, no im2col in HBM.
    x_cu = jnp.repeat(x_nchw, 2, axis=3)                                   # (N,C,H,2W)
    x_work = jnp.pad(
        x_cu, ((0, 0), (0, c_pad - c), (pad_lo, pad_hi), (p, p))
    ).astype(compute_dtype)                                                # (N,C_pad,Hp,2W+2p)

    # Pixel tile: target up to 8192 lanes, capped so the tap scratch, the f32
    # accumulator and the output blocks stay inside a conservative VMEM budget
    # (tightest on v7x: 64 MiB/TC).
    per_lane = kdim * itemsize + (2 * o_pad) * 4 + 2 * (2 * o_pad) * out_itemsize
    target_lanes = max(128, min(8192, ((20 << 20) // max(per_lane, 1)) // 128 * 128))
    th = _pick_block_h(h, two_w, block_h, target_lanes)
    n_rt = h // th
    pl_lanes = th * two_w
    sub_hint = 16 if th % 16 == 0 else (8 if th % 8 == 0 else 1)

    # Explicit VMEM accounting (double-buffered pipeline buffers + scratch).
    vmem_need = (
        2 * c_pad * hp * wcp * itemsize              # resident padded image
        + 2 * (2 * o_pad) * kdim * itemsize          # fused weights
        + 2 * (2 * o_pad) * pl_lanes * out_itemsize  # output blocks
        + kdim * pl_lanes * itemsize                 # tap-stack scratch
        + (2 * o_pad) * pl_lanes * 4                 # f32 matmul accumulator
        + 2 * c_pad * pl_lanes * itemsize            # in-flight tap slices
    )
    vmem_limit = int(min(max(vmem_need * 5 // 4 + (2 << 20), 32 << 20), 96 << 20))

    cost = pl.CostEstimate(
        flops=int(2 * n * (2 * o_pad) * kdim * h * two_w),
        transcendentals=0,
        bytes_accessed=int(
            n * c_pad * hp * wcp * itemsize
            + (2 * o_pad) * kdim * itemsize
            + n * (2 * o_pad) * h * two_w * out_itemsize),
    )

    kernel = _make_kernel(c_pad, k, n_shift, two_w, th, sub_hint)

    out_ph = pl.pallas_call(
        kernel,
        out_shape=jax.ShapeDtypeStruct((n, 2 * o_pad, h * two_w), out_dtype),
        grid_spec=pltpu.PrefetchScalarGridSpec(
            num_scalar_prefetch=0,
            grid=(n, n_rt),
            in_specs=[
                # Whole padded image per batch; index ignores rt so the block
                # stays VMEM-resident (one DMA per batch, no re-fetch).
                # TODO(synk): halo row-tile DMA path for images too big for VMEM.
                pl.BlockSpec((None, c_pad, hp, wcp), lambda b, rt: (b, 0, 0, 0)),
                # Fused weights: constant index -> resident, DMA'd once.
                pl.BlockSpec((2 * o_pad, kdim), lambda b, rt: (0, 0)),
            ],
            out_specs=pl.BlockSpec(
                (None, 2 * o_pad, pl_lanes), lambda b, rt: (b, 0, rt)),
            scratch_shapes=[pltpu.VMEM((kdim, pl_lanes), compute_dtype)],
        ),
        compiler_params=pltpu.CompilerParams(
            # rt is "arbitrary" when N >= 2: with the image resident per batch,
            # sharding rt across v7x's two TensorCores would make each core DMA
            # the full image; batches shard cleanly instead.
            dimension_semantics=("parallel", "arbitrary" if n >= 2 else "parallel"),
            vmem_limit_bytes=vmem_limit),
        cost_estimate=cost,
    )(x_work, wf)

    # Glue: row-granular interleave of the two row phases (columns are already
    # interleaved by the kernel); moves contiguous 2W-element rows only.
    out = out_ph.reshape(n, 2, o_pad, h, two_w)[:, :, :oc]
    out = jnp.transpose(out, (0, 2, 3, 1, 4))            # (N, O, H, 2, 2W)
    return out.reshape(n, oc, 2 * h, two_w)


if __name__ == "__main__":
    key = jax.random.PRNGKey(0)
    kx, kw = jax.random.split(key)

    N, C, H, W = 2, 4, 16, 16
    O, K = 8, 3

    x = jax.random.normal(kx, (N, C, H, W), dtype=jnp.float32)
    weight = 0.1 * jax.random.normal(kw, (O, C, K, K), dtype=jnp.float32)

    # XLA reference with the module's exact semantics (nearest-2x then conv).
    x_up = jnp.repeat(jnp.repeat(x, 2, axis=2), 2, axis=3)
    ref = jax.lax.conv_general_dilated(
        x_up, weight, window_strides=(1, 1),
        padding=[(K // 2, K // 2), (K // 2, K // 2)],
        dimension_numbers=("NCHW", "OIHW", "NCHW"))

    # f32 operands: tight check of the fold / indexing (multi-tile grid).
    out_f32 = jax.block_until_ready(
        jax.jit(lambda a, b: upconv(a, b, k=K, block_h=8,
                                    compute_dtype=jnp.float32))(x, weight))
    assert out_f32.shape == (N, O, 2 * H, 2 * W), out_f32.shape
    assert jnp.allclose(out_f32, ref, atol=1e-3, rtol=1e-3), "f32 mismatch vs reference"

    # Default bf16-MXU operands (f32 accumulation), auto-picked tile.
    out_bf16 = jax.block_until_ready(
        jax.jit(lambda a, b: upconv(a, b, k=K))(x, weight))
    assert out_bf16.shape == (N, O, 2 * H, 2 * W), out_bf16.shape
    max_err = float(jnp.max(jnp.abs(out_bf16 - ref)))
    assert max_err < 5e-2, f"bf16 mismatch vs reference (max err {max_err})"

    print("KERNEL_OK")
</pallas_src>

<mosaic_0001>
module attributes {stable_mosaic.version = 11 : i64} {
  func.func @kernel(%arg0: i32, %arg1: i32, %arg2: memref<1x8x18x34xf32, #tpu.memory_space<vmem>>, %arg3: memref<16x72xf32, #tpu.memory_space<vmem>>, %arg4: memref<1x16x256xf32, #tpu.memory_space<vmem>>, %arg5: memref<72x256xf32, #tpu.memory_space<vmem>>) attributes {dimension_semantics = [#tpu.dimension_semantics<parallel>, #tpu.dimension_semantics<arbitrary>], iteration_bounds = array<i64: 2, 2>, scalar_prefetch = 0 : i64, scratch_operands = 1 : i64, tpu.core_type = #tpu.core_type<tc>, window_params = [{transform_indices = @transform_0, window_bounds = array<i64: 1, 8, 18, 34>}, {pipeline_mode = #tpu.pipeline_mode<synchronous>, transform_indices = @transform_1, window_bounds = array<i64: 16, 72>}, {transform_indices = @transform_2, window_bounds = array<i64: 1, 16, 256>}]} {
    %c8_i32 = arith.constant 8 : i32
    %0 = arith.muli %arg1, %c8_i32 : i32
    %1 = tpu.assume_multiple %0, 8 : i32
    %c0_i32 = arith.constant 0 : i32
    %2 = arith.addi %1, %c0_i32 : i32
    %c0 = arith.constant 0 : index
    %c0_0 = arith.constant 0 : index
    %3 = arith.index_cast %2 : i32 to index
    %c0_1 = arith.constant 0 : index
    %4 = vector.load %arg2[%c0, %c0_0, %3, %c0_1] : memref<1x8x18x34xf32, #tpu.memory_space<vmem>>, vector<1x8x8x32xf32>
    %5 = vector.shape_cast %4 : vector<1x8x8x32xf32> to vector<8x8x32xf32>
    %6 = vector.shape_cast %5 : vector<8x8x32xf32> to vector<8x256xf32>
    %c0_2 = arith.constant 0 : index
    %c0_3 = arith.constant 0 : index
    %7 = vector.load %arg5[%c0_2, %c0_3] : memref<72x256xf32, #tpu.memory_space<vmem>>, vector<8x256xf32>
    tpu.vector_store %arg5[%c0_2, %c0_3], %6 {strides = array<i32>} : memref<72x256xf32, #tpu.memory_space<vmem>>, vector<8x256xf32>,
    %c0_i32_4 = arith.constant 0 : i32
    %8 = arith.addi %1, %c0_i32_4 : i32
    %c0_5 = arith.constant 0 : index
    %c0_6 = arith.constant 0 : index
    %9 = arith.index_cast %8 : i32 to index
    %c1 = arith.constant 1 : index
    %10 = vector.load %arg2[%c0_5, %c0_6, %9, %c1] : memref<1x8x18x34xf32, #tpu.memory_space<vmem>>, vector<1x8x8x32xf32>
    %11 = vector.shape_cast %10 : vector<1x8x8x32xf32> to vector<8x8x32xf32>
    %12 = vector.shape_cast %11 : vector<8x8x32xf32> to vector<8x256xf32>
    %c8 = arith.constant 8 : index
    %c0_7 = arith.constant 0 : index
    %13 = vector.load %arg5[%c8, %c0_7] : memref<72x256xf32, #tpu.memory_space<vmem>>, vector<8x256xf32>
    tpu.vector_store %arg5[%c8, %c0_7], %12 {strides = array<i32>} : memref<72x256xf32, #tpu.memory_space<vmem>>, vector<8x256xf32>,
    %c0_i32_8 = arith.constant 0 : i32
    %14 = arith.addi %1, %c0_i32_8 : i32
    %c0_9 = arith.constant 0 : index
    %c0_10 = arith.constant 0 : index
    %15 = arith.index_cast %14 : i32 to index
    %c2 = arith.constant 2 : index
    %16 = vector.load %arg2[%c0_9, %c0_10, %15, %c2] : memref<1x8x18x34xf32, #tpu.memory_space<vmem>>, vector<1x8x8x32xf32>
    %17 = vector.shape_cast %16 : vector<1x8x8x32xf32> to vector<8x8x32xf32>
    %18 = vector.shape_cast %17 : vector<8x8x32xf32> to vector<8x256xf32>
    %c16 = arith.constant 16 : index
    %c0_11 = arith.constant 0 : index
    %19 = vector.load %arg5[%c16, %c0_11] : memref<72x256xf32, #tpu.memory_space<vmem>>, vector<8x256xf32>
    tpu.vector_store %arg5[%c16, %c0_11], %18 {strides = array<i32>} : memref<72x256xf32, #tpu.memory_space<vmem>>, vector<8x256xf32>,
    %c1_i32 = arith.constant 1 : i32
    %20 = arith.addi %1, %c1_i32 : i32
    %c0_12 = arith.constant 0 : index
    %c0_13 = arith.constant 0 : index
    %21 = arith.index_cast %20 : i32 to index
    %c0_14 = arith.constant 0 : index
    %22 = vector.load %arg2[%c0_12, %c0_13, %21, %c0_14] : memref<1x8x18x34xf32, #tpu.memory_space<vmem>>, vector<1x8x8x32xf32>
    %23 = vector.shape_cast %22 : vector<1x8x8x32xf32> to vector<8x8x32xf32>
    %24 = vector.shape_cast %23 : vector<8x8x32xf32> to vector<8x256xf32>
    %c24 = arith.constant 24 : index
    %c0_15 = arith.constant 0 : index
    %25 = vector.load %arg5[%c24, %c0_15] : memref<72x256xf32, #tpu.memory_space<vmem>>, vector<8x256xf32>
    tpu.vector_store %arg5[%c24, %c0_15], %24 {strides = array<i32>} : memref<72x256xf32, #tpu.memory_space<vmem>>, vector<8x256xf32>,
    %c1_i32_16 = arith.constant 1 : i32
    %26 = arith.addi %1, %c1_i32_16 : i32
    %c0_17 = arith.constant 0 : index
    %c0_18 = arith.constant 0 : index
    %27 = arith.index_cast %26 : i32 to index
    %c1_19 = arith.constant 1 : index
    %28 = vector.load %arg2[%c0_17, %c0_18, %27, %c1_19] : memref<1x8x18x34xf32, #tpu.memory_space<vmem>>, vector<1x8x8x32xf32>
    %29 = vector.shape_cast %28 : vector<1x8x8x32xf32> to vector<8x8x32xf32>
    %30 = vector.shape_cast %29 : vector<8x8x32xf32> to vector<8x256xf32>
    %c32 = arith.constant 32 : index
    %c0_20 = arith.constant 0 : index
    %31 = vector.load %arg5[%c32, %c0_20] : memref<72x256xf32, #tpu.memory_space<vmem>>, vector<8x256xf32>
    tpu.vector_store %arg5[%c32, %c0_20], %30 {strides = array<i32>} : memref<72x256xf32, #tpu.memory_space<vmem>>, vector<8x256xf32>,
    %c1_i32_21 = arith.constant 1 : i32
    %32 = arith.addi %1, %c1_i32_21 : i32
    %c0_22 = arith.constant 0 : index
    %c0_23 = arith.constant 0 : index
    %33 = arith.index_cast %32 : i32 to index
    %c2_24 = arith.constant 2 : index
    %34 = vector.load %arg2[%c0_22, %c0_23, %33, %c2_24] : memref<1x8x18x34xf32, #tpu.memory_space<vmem>>, vector<1x8x8x32xf32>
    %35 = vector.shape_cast %34 : vector<1x8x8x32xf32> to vector<8x8x32xf32>
    %36 = vector.shape_cast %35 : vector<8x8x32xf32> to vector<8x256xf32>
    %c40 = arith.constant 40 : index
    %c0_25 = arith.constant 0 : index
    %37 = vector.load %arg5[%c40, %c0_25] : memref<72x256xf32, #tpu.memory_space<vmem>>, vector<8x256xf32>
    tpu.vector_store %arg5[%c40, %c0_25], %36 {strides = array<i32>} : memref<72x256xf32, #tpu.memory_space<vmem>>, vector<8x256xf32>,
    %c2_i32 = arith.constant 2 : i32
    %38 = arith.addi %1, %c2_i32 : i32
    %c0_26 = arith.constant 0 : index
    %c0_27 = arith.constant 0 : index
    %39 = arith.index_cast %38 : i32 to index
    %c0_28 = arith.constant 0 : index
    %40 = vector.load %arg2[%c0_26, %c0_27, %39, %c0_28] : memref<1x8x18x34xf32, #tpu.memory_space<vmem>>, vector<1x8x8x32xf32>
    %41 = vector.shape_cast %40 : vector<1x8x8x32xf32> to vector<8x8x32xf32>
    %42 = vector.shape_cast %41 : vector<8x8x32xf32> to vector<8x256xf32>
    %c48 = arith.constant 48 : index
    %c0_29 = arith.constant 0 : index
    %43 = vector.load %arg5[%c48, %c0_29] : memref<72x256xf32, #tpu.memory_space<vmem>>, vector<8x256xf32>
    tpu.vector_store %arg5[%c48, %c0_29], %42 {strides = array<i32>} : memref<72x256xf32, #tpu.memory_space<vmem>>, vector<8x256xf32>,
    %c2_i32_30 = arith.constant 2 : i32
    %44 = arith.addi %1, %c2_i32_30 : i32
    %c0_31 = arith.constant 0 : index
    %c0_32 = arith.constant 0 : index
    %45 = arith.index_cast %44 : i32 to index
    %c1_33 = arith.constant 1 : index
    %46 = vector.load %arg2[%c0_31, %c0_32, %45, %c1_33] : memref<1x8x18x34xf32, #tpu.memory_space<vmem>>, vector<1x8x8x32xf32>
    %47 = vector.shape_cast %46 : vector<1x8x8x32xf32> to vector<8x8x32xf32>
    %48 = vector.shape_cast %47 : vector<8x8x32xf32> to vector<8x256xf32>
    %c56 = arith.constant 56 : index
    %c0_34 = arith.constant 0 : index
    %49 = vector.load %arg5[%c56, %c0_34] : memref<72x256xf32, #tpu.memory_space<vmem>>, vector<8x256xf32>
    tpu.vector_store %arg5[%c56, %c0_34], %48 {strides = array<i32>} : memref<72x256xf32, #tpu.memory_space<vmem>>, vector<8x256xf32>,
    %c2_i32_35 = arith.constant 2 : i32
    %50 = arith.addi %1, %c2_i32_35 : i32
    %c0_36 = arith.constant 0 : index
    %c0_37 = arith.constant 0 : index
    %51 = arith.index_cast %50 : i32 to index
    %c2_38 = arith.constant 2 : index
    %52 = vector.load %arg2[%c0_36, %c0_37, %51, %c2_38] : memref<1x8x18x34xf32, #tpu.memory_space<vmem>>, vector<1x8x8x32xf32>
    %53 = vector.shape_cast %52 : vector<1x8x8x32xf32> to vector<8x8x32xf32>
    %54 = vector.shape_cast %53 : vector<8x8x32xf32> to vector<8x256xf32>
    %c64 = arith.constant 64 : index
    %c0_39 = arith.constant 0 : index
    %55 = vector.load %arg5[%c64, %c0_39] : memref<72x256xf32, #tpu.memory_space<vmem>>, vector<8x256xf32>
    tpu.vector_store %arg5[%c64, %c0_39], %54 {strides = array<i32>} : memref<72x256xf32, #tpu.memory_space<vmem>>, vector<8x256xf32>,
    %c0_40 = arith.constant 0 : index
    %c0_41 = arith.constant 0 : index
    %56 = vector.load %arg3[%c0_40, %c0_41] : memref<16x72xf32, #tpu.memory_space<vmem>>, vector<16x72xf32>
    %c0_42 = arith.constant 0 : index
    %c0_43 = arith.constant 0 : index
    %57 = vector.load %arg5[%c0_42, %c0_43] : memref<72x256xf32, #tpu.memory_space<vmem>>, vector<72x256xf32>
    %cst = arith.constant dense<0.000000e+00> : vector<16x256xf32>
    %58 = tpu.matmul %56, %57, %cst {dimension_numbers = #tpu.dot_dimension_numbers<[1], [0], [0], [1], [0, 0, 1, 1], [], []>} : vector<16x72xf32>, vector<72x256xf32>, vector<16x256xf32> -> vector<16x256xf32>
    %c0_44 = arith.constant 0 : index
    %c0_45 = arith.constant 0 : index
    %c0_46 = arith.constant 0 : index
    %59 = vector.load %arg4[%c0_44, %c0_45, %c0_46] : memref<1x16x256xf32, #tpu.memory_space<vmem>>, vector<1x16x256xf32>
    %60 = vector.shape_cast %59 : vector<1x16x256xf32> to vector<16x256xf32>
    %61 = vector.shape_cast %58 : vector<16x256xf32> to vector<1x16x256xf32>
    tpu.vector_store %arg4[%c0_44, %c0_45, %c0_46], %61 {strides = array<i32>} : memref<1x16x256xf32, #tpu.memory_space<vmem>>, vector<1x16x256xf32>,
    return
  }
  func.func @transform_0(%arg0: i32, %arg1: i32) -> (i32, i32, i32, i32) {
    %c0_i32 = arith.constant 0 : i32
    %c0_i32_0 = arith.constant 0 : i32
    %c0_i32_1 = arith.constant 0 : i32
    %c0_i32_2 = arith.constant 0 : i32
    return %arg0, %c0_i32, %c0_i32_0, %c0_i32_1 : i32, i32, i32, i32
  }
  func.func @transform_1(%arg0: i32, %arg1: i32) -> (i32, i32) {
    %c0_i32 = arith.constant 0 : i32
    %c0_i32_0 = arith.constant 0 : i32
    %c0_i32_1 = arith.constant 0 : i32
    return %c0_i32, %c0_i32_0 : i32, i32
  }
  func.func @transform_2(%arg0: i32, %arg1: i32) -> (i32, i32, i32) {
    %c0_i32 = arith.constant 0 : i32
    %c0_i32_0 = arith.constant 0 : i32
    return %arg0, %c0_i32, %arg1 : i32, i32, i32
  }
}

</mosaic_0001>

<bundles_post_ra>
// kernel: _lambda_.1
= control target key start
LH: loop header
LB: loop body
LE: loop exit
PB: predicated region body
PF: predicated region fallthrough
CT: control target
= control target key end

     0   :  { %s2391_s9 = smov 0   ;;  %s2393_s10 = smov 0   ;;  %s3613_s0 = inlined_call_operand.vmem [shape: f32[2,8,18,34], index: 0, kind: input, shape index: {}]   ;;  %s3614_s1 = inlined_call_operand.vmem [shape: f32[16,72], index: 1, kind: input, shape index: {}]   ;;  %s3615_s2 = inlined_call_operand.vmem [shape: f32[2,16,512], index: 2, kind: output, shape index: {}]  }
   0x1   :  { %s2395_s11 = smov 0   ;;  %s2397_s12 = smov 0  }
   0x2   :  { %s2399_s13 = smov 0   ;;  %s2401_s14 = smov 0  }
   0x3   :  { %s2403_s15 = smov 0  }
   0x4 LB: > { %s21_s16 = sadd.s32 1, %s2359_s13  ;;  %s24_s17 = sadd.s32 1, %s2363_s14  ;;  %s2367_s15 = sphi %s2403_s15, %s12_s15   ;;  %s2363_s14 = sphi %s2401_s14, %s3697_s14   ;;  %s2359_s13 = sphi %s2399_s13, %s3696_s13   ;;  %s2355_s12 = sphi %s2397_s12, %s3695_s12   ;;  %s2351_s11 = sphi %s2395_s11, %s3694_s11   ;;  %s2347_s10 = sphi %s2393_s10, %s3693_s10   ;;  %s2343_s9 = sphi %s2391_s9, %s3692_s9  }
   0x5   : > { %p22_p0 = scmp.ge.s32.totalorder %s21_s16, 2  ;;  %s1908_s18 = sadd.s32 4294967295, %s2367_s15  }
   0x6   : > { %p90_p1 = scmp.ne.s32.totalorder %s2347_s10, %s2343_s9  ;;  %p91_p2 = scmp.eq.s32.totalorder %s1908_s18, 3 }
   0x7   : > { %s3699_s16 = smov (%p22_p0, %s21_s16), 0  ;;  %s3701_s17 = smov (!%p22_p0, %s24_s17), %s2363_s14 }
   0x8   : > { %s76_s19 = ssub.s32 %s2359_s13, %s3699_s16  ;;  %p26_p3 = scmp.ge.s32.totalorder %s3701_s17, 2 }
   0x9   : > { %p1912_p4 = scmp.ge.s32.totalorder %s2367_s15, 1  ;;  %p2437_p5 = por %p91_p2, %p90_p1 }
   0xa   : > { %p126_p6 = scmp.lt.s32.totalorder %s2367_s15, 5  ;;  %s3703_s17 = smov (%p26_p3, %s3701_s17), 0 }
   0xb   : > { %s75_s21 = ssub.s32 %s2363_s14, %s3703_s17  ;;  %s80_s23 = sadd.s32 1, %s2347_s10 }
   0xc   : > { %p127_p7 = pnand %p1912_p4, %p126_p6  ;;  %s77_s22 = sor.u32 %s76_s19, %s75_s21 }
   0xd   : > { %p78_p8 = scmp.eq.s32.totalorder %s77_s22, 0 }
   0xe   : > { %130 = sbr.rel (%p127_p7) target bundleno = 536 (0x218), region = 28 }
   0xf   : > { %s2448_s24 = scalar_select %p78_p8, %s2347_s10, %s80_s23  }
  0x13   : > { %p147_p9 = scmp.lt.s32.totalorder %s2355_s12, 1  ;;  %s1915_s27 = sshll.u32 %s2351_s11, 3  ;;  %v2369_v0 = vmov 1983009808   ;;  %v2370_v2 = vmov 1934713408  }
  0x14   : > { %v169_v1 = vunpack.c.l.s4 %v2369_v0  ;;  %v217_v3 = vunpack.c.l.s4 %v2370_v2  ;;  %vm164_vm0 = vcmask 1047556   ;;  %s2371_s4 = smov 127   ;;  %s2372_s5 = smov 126   ;;  %vm300_vm1 = vcmask 261120  }
  0x15   : > { %s148_s25 = scalar_select %p147_p9, %s2355_s12, 1  ;;  %vm302_vm2 = vcmask 523264   ;;  %vm304_vm3 = vcmask 785408   ;;  %vm1743_vm4 = vcmask 588800  }
  0x16   : > { %v2465_v7 = vunpack.c.0.s8 %v169_v1  ;;  %v2467_v8 = vunpack.c.0.s8 %v217_v3  ;;  %s2373_s6 = smov 32   ;;  %s2374_s7 = smov 96  }
  0x17   : > { %s1994_s26 = smul.u32 192, %s148_s25  ;;  %s2375_s8 = smov 64  }
  0x18   : > { %s144_s23 = sand.u32 1, %s2343_s9   ;;  %s1972_s28 = sshll.u32 (%p2437_p5), %s2355_s12, 3 }
  0x19   : > { %s151_s30 = scalar_lea.vmem %s3613_s0, %s1994_s26  ;;  %s1913_s25 = sshll.u32 %s144_s23, 5 }
  0x1a   : > { %s2456_s3 = scalar_lea.vmem %s151_s30, %s1915_s27  ;;  %s146_s26 = scalar_lea.vmem [#allocation3], %s1913_s25 }
  0x1b   : > { %v311_v4 = vld [vmem:[%s2456_s3] sm:$0xff]  ;;  %v2460_v5 = vld [vmem:[%s2456_s3 + $0x18] sm:$0xff]  ;;  %v2463_v6 = vld [vmem:[%s2456_s3 + $0x90] sm:$0xff]  ;;  %s1971_s27 = sshll.u32 (%p2437_p5), %s2351_s11, 1 }
  0x1c   : > { %v2058_v9 = vpack.i.bf16 %v2460_v5, %v311_v4  ;;  %v2471_v10 = vld [vmem:[%s2456_s3 + $0xa8] sm:$0xff]  ;;  %v2474_v11 = vld [vmem:[%s2456_s3 + $0x1a] sm:$0xff]  ;;  %v2477_v12 = vld [vmem:[%s2456_s3 + $0x30] sm:$0xff]  ;;  %v166_v13 = vrot.slane %v311_v4, 4  ;;  %v178_v14 = vrot.slane %v2460_v5, 4  ;;  %v188_v15 = vrot.slane %v2463_v6, 4  ;;  %s1809_s29 = sadd.s32 (%p2437_p5), %s1972_s28, %s1971_s27 }
  0x1d   : > { %v2073_v16 = vpack.i.bf16 %v2471_v10, %v2463_v6  ;;  %v2078_v17 = vpack.i.bf16 %v2474_v11, %v311_v4  ;;  %v2485_v18 = vld [vmem:[%s2456_s3 + $0x48] sm:$0xff]  ;;  %v2488_v19 = vld [vmem:[%s2456_s3 + $0x60] sm:$0xff]  ;;  %v163_v20 = vrot.slane %v2477_v12, 4  ;;  %v200_v21 = vrot.slane %v2471_v10, 4  ;;  %v2494_v22 = vld [vmem:[%s2456_s3 + $0x78] sm:$0xff]  ;;  %s1973_s9 = sshll.u32 (%p2437_p5), %s1809_s29, 3 }
  0x1e   : > { %2059 = vrot.lane.b32.xlu1 %v2058_v9, %s2371_s4  ;;  %v167_v23 = vsel %vm164_vm0, %v2477_v12, %v166_v13  ;;  %v176_v24 = vrot.slane %v2485_v18, 4  ;;  %v179_v25 = vsel %vm164_vm0, %v2485_v18, %v178_v14  ;;  %v189_v26 = vsel %vm164_vm0, %v188_v15, %v2488_v19 }
  0x1f   : > { %2074 = vrot.lane.b32.xlu0 %v2073_v16, %s2371_s4  ;;  %v165_v27 = vsel %vm164_vm0, %v163_v20, %v311_v4  ;;  %v175_v28 = vperm.slane %v167_v23, %v2465_v7  ;;  %v187_v29 = vperm.slane %v179_v25, %v2465_v7  ;;  %v190_v30 = vrot.slane %v2488_v19, 4 }
  0x20   : > { %v171_v31 = vperm.slane %v165_v27, %v2465_v7  ;;  %v177_v32 = vsel %vm164_vm0, %v176_v24, %v2460_v5  ;;  %v195_v33 = vperm.slane %v189_v26, %v2465_v7  ;;  %v201_v34 = vsel %vm164_vm0, %v200_v21, %v2494_v22 }
  0x21   : > { %v183_v35 = vperm.slane %v177_v32, %v2465_v7  ;;  %v191_v36 = vsel %vm164_vm0, %v2463_v6, %v190_v30  ;;  %v202_v37 = vrot.slane %v2494_v22, 4  ;;  %v207_v38 = vperm.slane %v201_v34, %v2465_v7  ;;  %v2575_v32 = vld [vmem:[%s2456_s3 + $0x2] sm:$0xff] }
  0x22   : > { %v199_v39 = vperm.slane %v191_v36, %v2465_v7  ;;  %v224_v40 = vrot.slane %v187_v29, 4  ;;  %v214_v41 = vrot.slane %v171_v31, 4  ;;  %v226_v42 = vrot.slane %v175_v28, 4 }
  0x23   : > { %v203_v43 = vsel %vm164_vm0, %v2471_v10, %v202_v37  ;;  %v212_v44 = vrot.slane %v183_v35, 4  ;;  %v236_v45 = vrot.slane %v207_v38, 4  ;;  %v238_v46 = vrot.slane %v195_v33, 4  ;;  %v2582_v37 = vld [vmem:[%s2456_s3 + $0x7a] sm:$0xff] }
  0x24   : > { %v211_v47 = vperm.slane %v203_v43, %v2465_v7  ;;  %v225_v48 = vsel %vm164_vm0, %v224_v40, %v175_v28  ;;  %v215_v49 = vsel %vm164_vm0, %v183_v35, %v214_v41  ;;  %v227_v50 = vsel %vm164_vm0, %v187_v29, %v226_v42  ;;  %v2566_v28 = vld [vmem:[%s2456_s3 + $0x4a] sm:$0xff] }
  0x25   : > { %v213_v51 = vsel %vm164_vm0, %v212_v44, %v171_v31  ;;  %v2528_v52 = vperm.slane %v225_v48, %v2467_v8  ;;  %v237_v53 = vsel %vm164_vm0, %v236_v45, %v195_v33  ;;  %v223_v54 = vperm.slane %v215_v49, %v2467_v8  ;;  %v1954_v31 = vld [vmem:[%s2456_s3 + $0x62] sm:$0xff]  ;;  %v1964_v33 = vld [vmem:[%s2456_s3 + $0x92] sm:$0xff]  ;;  %v2591_v40 = vld [vmem:[%s2456_s3 + $0xaa] sm:$0xff] }
  0x26   : > { %2079 = vrot.lane.b32.xlu1 %v2078_v17, %s2372_s5  ;;  %v2534_v55 = vperm.slane %v213_v51, %v2467_v8  ;;  %v2537_v56 = vperm.slane %v237_v53, %v2467_v8  ;;  %v248_v57 = vrot.slane %v211_v47, 4  ;;  %v235_v58 = vperm.slane %v227_v50, %v2467_v8  ;;  %v2597_v43 = vld [vmem:[%s2456_s3 + $0x49] sm:$0xff]  ;;  %v2600_v44 = vld [vmem:[%s2456_s3 + $0x61] sm:$0xff]  ;;  %v2616_v48 = vld [vmem:[%s2456_s3 + $0x79] sm:$0xff] }
  0x27   : > { %3637 = vst [vmem:[#allocation4_spill] sm:$0xff] %v2528_v52  ;;  %v270_v59 = vrot.slane %v2528_v52, 4  ;;  %v239_v60 = vsel %vm164_vm0, %v207_v38, %v238_v46  ;;  %v250_v61 = vrot.slane %v199_v39, 4  ;;  %v266_v62 = vrot.slane %v223_v54, 4  ;;  %v1960_v38 = vld [vmem:[%s2456_s3 + $0x32] sm:$0xff] }
  0x28   : > { %3638 = vst [vmem:[#allocation5_spill] sm:$0xff] %v2534_v55  ;;  %v249_v63 = vsel %vm164_vm0, %v248_v57, %v199_v39  ;;  %v262_v0 = vrot.slane %v2534_v55, 4  ;;  %v247_v1 = vperm.slane %v239_v60, %v2467_v8  ;;  %v274_v4 = vrot.slane %v235_v58, 4  ;;  %v2588_v39 = vld [vmem:[%s2456_s3 + $0x19] sm:$0xff]  ;;  %v2624_v51 = vld [vmem:[%s2456_s3 + $0x91] sm:$0xff]  ;;  %v2639_v57 = vld [vmem:[%s2456_s3 + $0xa9] sm:$0xff] }
  0x29   : > { %v2546_v2 = vperm.slane %v249_v63, %v2467_v8  ;;  %v251_v3 = vsel %vm164_vm0, %v211_v47, %v250_v61  ;;  %v2063_v9 = vpack.i.bf16 %v2485_v18, %v2477_v12  ;;  %v2068_v27 = vpack.i.bf16 %v2494_v22, %v2488_v19 }
  0x2a   : > { %v263_v13 = vsel %vm164_vm0, %v2537_v56, %v262_v0  ;;  %v259_v14 = vperm.slane %v251_v3, %v2467_v8  ;;  %v267_v15 = vsel %vm164_vm0, %v247_v1, %v266_v62  ;;  %v264_v17 = vrot.slane %v247_v1, 4 }
  0x2b   : > { %v271_v16 = vsel %vm164_vm0, %v2546_v2, %v270_v59  ;;  %2064 = vrot.lane.b32.xlu2 %v2063_v9, %s2371_s4  ;;  %v2108_v30 = vpack.i.bf16 %v2566_v28, %v2474_v11  ;;  %v2083_v34 = vpack.i.bf16 %v1954_v31, %v2566_v28  ;;  %v2098_v35 = vpack.i.bf16 %v2575_v32, %v1964_v33 }
  0x2c   : > { %v2088_v20 = vpack.i.bf16 %v271_v16, %v263_v13  ;;  %v275_v21 = vsel %vm164_vm0, %v259_v14, %v274_v4  ;;  %v272_v23 = vrot.slane %v259_v14, 4  ;;  %v265_v25 = vsel %vm164_vm0, %v264_v17, %v223_v54 }
  0x2d   : > { %v2103_v24 = vpack.i.bf16 %v275_v21, %v267_v15  ;;  %v2123_v36 = vpack.i.bf16 %v1964_v33, %v1954_v31  ;;  %v2113_v41 = vpack.i.bf16 %v2582_v37, %v1960_v38  ;;  %v2178_v42 = vpack.i.bf16 %v2488_v19, %v2485_v18  ;;  %v2613_v19 = vld [vmem:[%s2456_s3 + $0x31] sm:$0xff] }
  0x2e   : > { %2089 = vrot.lane.b32.xlu0 %v2088_v20, %s2373_s6  ;;  %v273_v26 = vsel %vm164_vm0, %v272_v23, %v235_v58  ;;  %v2118_v45 = vpack.i.bf16 %v2588_v39, %v2591_v40  ;;  %v2138_v46 = vpack.i.bf16 %v2600_v44, %v2597_v43  ;;  %v2188_v47 = vpack.i.bf16 %v2471_v10, %v2494_v22  ;;  %v2628_v10 = vld [vmem:[%s2456_s3 + $0x1] sm:$0xff] }
  0x2f   : > { %2104 = vrot.lane.b32.xlu1 %v2103_v24, %s2374_s7  ;;  %v2093_v29 = vpack.i.bf16 %v273_v26, %v265_v25  ;;  %v2128_v18 = vpack.i.bf16 %v1960_v38, %v2575_v32  ;;  %v2133_v49 = vpack.i.bf16 %v2591_v40, %v2582_v37  ;;  %v2153_v50 = vpack.i.bf16 %v2616_v48, %v2613_v19 }
  0x30   : > { %v2143_v22 = vpack.i.bf16 %v2628_v10, %v2624_v51  ;;  %v2148_v53 = vpack.i.bf16 %v2597_v43, %v2588_v39  ;;  %v2168_v54 = vpack.i.bf16 %v2613_v19, %v2628_v10  ;;  %v2158_v58 = vpack.i.bf16 %v2460_v5, %v2639_v57 }
  0x31   : > { %v2163_v59 = vpack.i.bf16 %v2624_v51, %v2600_v44  ;;  %v2183_v60 = vpack.i.bf16 %v2477_v12, %v2463_v6  ;;  %v2173_v61 = vpack.i.bf16 %v2639_v57, %v2616_v48  ;;  %v1235_v5 = vrot.slane %v1964_v33, 4 }
  0x32   : > { %v1237_v62 = vrot.slane %v1954_v31, 4  ;;  %v1223_v63 = vrot.slane %v2566_v28, 4  ;;  %v1225_v0 = vrot.slane %v2474_v11, 4  ;;  %v1211_v6 = vrot.slane %v1960_v38, 4 }
  0x33   : > { %2069 = vrot.lane.b32.xlu2 %v2068_v27, %s2371_s4  ;;  %v1213_v12 = vrot.slane %v2575_v32, 4  ;;  %v1236_v1 = vsel %vm164_vm0, %v1235_v5, %v1954_v31  ;;  %v1247_v23 = vrot.slane %v2591_v40, 4  ;;  %v1249_v24 = vrot.slane %v2582_v37, 4 }
  0x34   : > { %v1238_v3 = vsel %vm164_vm0, %v1964_v33, %v1237_v62  ;;  %v1224_v4 = vsel %vm164_vm0, %v1223_v63, %v2474_v11  ;;  %v1226_v9 = vsel %vm164_vm0, %v2566_v28, %v1225_v0  ;;  %v1242_v13 = vperm.slane %v1236_v1, %v2465_v7 }
  0x35   : > { %v1246_v14 = vperm.slane %v1238_v3, %v2465_v7  ;;  %v1212_v15 = vsel %vm164_vm0, %v1211_v6, %v2575_v32  ;;  %v1214_v16 = vsel %vm164_vm0, %v1960_v38, %v1213_v12  ;;  %v1230_v17 = vperm.slane %v1224_v4, %v2465_v7 }
  0x36   : > { %2094 = vrot.lane.b32.xlu0 %v2093_v29, %s2375_s8  ;;  %v1234_v20 = vperm.slane %v1226_v9, %v2465_v7  ;;  %v1218_v11 = vperm.slane %v1212_v15, %v2465_v7  ;;  %v1222_v21 = vperm.slane %v1214_v16, %v2465_v7  ;;  %v1285_v25 = vrot.slane %v1242_v13, 4 }
  0x37   : > { %2109 = vrot.lane.b32.xlu1 %v2108_v30, %s2371_s4  ;;  %v1297_v26 = vrot.slane %v1246_v14, 4  ;;  %v1259_v27 = vrot.slane %v1230_v17, 4  ;;  %v1248_v29 = vsel %vm164_vm0, %v1247_v23, %v2582_v37  ;;  %v1250_v30 = vsel %vm164_vm0, %v2591_v40, %v1249_v24 }
  0x38   : > { %v1271_v28 = vrot.slane %v1234_v20, 4  ;;  %v1261_v31 = vrot.slane %v1218_v11, 4  ;;  %v1273_v32 = vrot.slane %v1222_v21, 4  ;;  %v1254_v33 = vperm.slane %v1248_v29, %v2465_v7 }
  0x39   : > { %v701_v15 = vrot.slane %v2597_v43, 4  ;;  %v703_v16 = vrot.slane %v2588_v39, 4  ;;  %v727_v23 = vrot.slane %v2616_v48, 4 }
  0x3a   : > { %v1262_v38 = vsel %vm164_vm0, %v1230_v17, %v1261_v31  ;;  %v713_v17 = vrot.slane %v2624_v51, 4 }
  0x3b   : > { %2084 = vrot.lane.b32.xlu2 %v2083_v34, %s2372_s5  ;;  %v1258_v34 = vperm.slane %v1250_v30, %v2465_v7  ;;  %v2694_v40 = vperm.slane %v1262_v38, %v2467_v8 }
  0x3d   : > { %v1313_v38 = vrot.slane %v2694_v40, 4 }
  0x3e   : > { %2099 = vrot.lane.b32.xlu0 %v2098_v35, %s2372_s5  ;;  %v1260_v35 = vsel %vm164_vm0, %v1259_v27, %v1218_v11  ;;  %v702_v11 = vsel %vm164_vm0, %v701_v15, %v2588_v39  ;;  %v714_v27 = vsel %vm164_vm0, %v713_v17, %v2600_v44 }
  0x3f   : > { %2124 = vrot.lane.b32.xlu1 %v2123_v36, %s2371_s4  ;;  %v1272_v36 = vsel %vm164_vm0, %v1271_v28, %v1222_v21  ;;  %v725_v21 = vrot.slane %v2639_v57, 4  ;;  %v720_v29 = vperm.slane %v714_v27, %v2465_v7 }
  0x40   : > { %v2691_v37 = vperm.slane %v1272_v36, %v2467_v8 }
  0x41   : > { %v726_v31 = vsel %vm164_vm0, %v725_v21, %v2616_v48 }
  0x42   : > { %3640 = vst [vmem:[#allocation7_spill] sm:$0xff] %v2691_v37 }
  0x43   : > { %2114 = vrot.lane.b32.xlu2 %v2113_v41, %s2372_s5  ;;  %v1274_v41 = vsel %vm164_vm0, %v1234_v20, %v1273_v32  ;;  %v715_v20 = vrot.slane %v2600_v44, 4  ;;  %v732_v32 = vperm.slane %v726_v31, %v2465_v7 }
  0x45   : > { %v716_v28 = vsel %vm164_vm0, %v2624_v51, %v715_v20  ;;  %v763_v51 = vrot.slane %v720_v29, 4 }
  0x46   : > { %2119 = vrot.lane.b32.xlu0 %v2118_v45, %s2372_s5  ;;  %v2697_v45 = vperm.slane %v1274_v41, %v2467_v8  ;;  %v724_v30 = vperm.slane %v716_v28, %v2465_v7 }
  0x47   : > { %2139 = vrot.lane.b32.xlu1 %v2138_v46, %s2372_s5  ;;  %v1286_v46 = vsel %vm164_vm0, %v1254_v33, %v1285_v25  ;;  %v704_v25 = vsel %vm164_vm0, %v2597_v43, %v703_v16  ;;  %v728_v43 = vsel %vm164_vm0, %v2639_v57, %v727_v23  ;;  %v764_v57 = vsel %vm164_vm0, %v732_v32, %v763_v51 }
  0x48   : > { %v712_v39 = vperm.slane %v704_v25, %v2465_v7  ;;  %v775_v36 = vrot.slane %v724_v30, 4  ;;  %v1321_v41 = vrot.slane %v2697_v45, 4 }
  0x4b   : > { %2129 = vrot.lane.b32.xlu2 %v2128_v18, %s2371_s4  ;;  %v1294_v18 = vperm.slane %v1286_v46, %v2467_v8 }
  0x4e   : > { %2134 = vrot.lane.b32.xlu0 %v2133_v49, %s2371_s4 }
  0x4f   : > { %2154 = vrot.lane.b32.xlu1 %v2153_v50, %s2372_s5  ;;  %v1283_v50 = vrot.slane %v1254_v33, 4  ;;  %v736_v33 = vperm.slane %v728_v43, %v2465_v7 }
  0x51   : > { %v1284_v5 = vsel %vm164_vm0, %v1283_v50, %v1242_v13 }
  0x52   : > { %v2710_v63 = vperm.slane %v1284_v5, %v2467_v8 }
  0x53   : > { %2144 = vrot.lane.b32.xlu2 %v2143_v22, %s2372_s5  ;;  %v1295_v22 = vrot.slane %v1258_v34, 4 }
  0x54   : > { %3641 = vst [vmem:[#allocation8_spill] sm:$0xff] %v2710_v63 }
  0x55   : > { %v1296_v62 = vsel %vm164_vm0, %v1295_v22, %v1246_v14  ;;  %v2767_v22 = vperm.slane %v764_v57, %v2467_v8 }
  0x56   : > { %2149 = vrot.lane.b32.xlu0 %v2148_v53, %s2371_s4  ;;  %v2713_v0 = vperm.slane %v1296_v62, %v2467_v8 }
  0x57   : > { %2169 = vrot.lane.b32.xlu1 %v2168_v54, %s2371_s4  ;;  %v1317_v54 = vrot.slane %v2691_v37, 4 }
  0x58   : > { %3642 = vst [vmem:[#allocation9_spill] sm:$0xff] %v2713_v0 }
  0x5b   : > { %2159 = vrot.lane.b32.xlu2 %v2158_v58, %s2372_s5  ;;  %v689_v58 = vrot.slane %v2613_v19, 4 }
  0x5d   : > { %v690_v6 = vsel %vm164_vm0, %v689_v58, %v2628_v10 }
  0x5e   : > { %2164 = vrot.lane.b32.xlu0 %v2163_v59, %s2371_s4  ;;  %v691_v59 = vrot.slane %v2628_v10, 4  ;;  %v696_v4 = vperm.slane %v690_v6, %v2465_v7  ;;  %v1318_v10 = vsel %vm164_vm0, %v2713_v0, %v1317_v54  ;;  %v1314_v54 = vsel %vm164_vm0, %v1294_v18, %v1313_v38 }
  0x5f   : > { %2184 = vrot.lane.b32.xlu1 %v2183_v60, %s2372_s5  ;;  %v1311_v60 = vrot.slane %v1294_v18, 4  ;;  %v761_v6 = vrot.slane %v732_v32, 4 }
  0x60   : > { %v692_v12 = vsel %vm164_vm0, %v2613_v19, %v691_v59  ;;  %v739_v24 = vrot.slane %v696_v4, 4 }
  0x61   : > { %v1312_v1 = vsel %vm164_vm0, %v1311_v60, %v2694_v40  ;;  %v700_v9 = vperm.slane %v692_v12, %v2465_v7  ;;  %v789_v60 = vrot.slane %v2767_v22, 4  ;;  %v773_v12 = vrot.slane %v736_v33, 4 }
  0x63   : > { %2174 = vrot.lane.b32.xlu2 %v2173_v61, %s2371_s4  ;;  %s1811_s4 = scalar_lea.vmem (%p2437_p5), %s3615_s2, %s1973_s9 }
  0x66   : > { %2179 = vrot.lane.b32.xlu0 %v2178_v42, %s2372_s5  ;;  %v2688_v42 = vperm.slane %v1260_v35, %v2467_v8 }
  0x68   : > { %3639 = vst [vmem:[#allocation6_spill] sm:$0xff] %v2688_v42  ;;  %v1309_v53 = vrot.slane %v2688_v42, 4 }
  0x6a   : > { %v1310_v14 = vsel %vm164_vm0, %v2710_v63, %v1309_v53  ;;  %v776_v53 = vsel %vm164_vm0, %v736_v33, %v775_v36 }
  0x6b   : > { %2189 = vrot.lane.b32.xlu2 %v2188_v47, %s2372_s5  ;;  %v1298_v47 = vsel %vm164_vm0, %v1258_v34, %v1297_v26  ;;  %v2193_v19 = vpack.i.bf16 %v1318_v10, %v1310_v14  ;;  %v708_v26 = vperm.slane %v702_v11, %v2465_v7  ;;  %v751_v34 = vrot.slane %v700_v9, 4 }
  0x6c   : > { %v1306_v49 = vperm.slane %v1298_v47, %v2467_v8  ;;  %v749_v47 = vrot.slane %v712_v39, 4  ;;  %v2772_v40 = vperm.slane %v776_v53, %v2467_v8 }
  0x6d   : > { %v740_v44 = vsel %vm164_vm0, %v708_v26, %v739_v24  ;;  %v752_v48 = vsel %vm164_vm0, %v712_v39, %v751_v34  ;;  %v737_v46 = vrot.slane %v708_v26, 4 }
  0x6e   : > { %v1319_v61 = vrot.slane %v1306_v49, 4  ;;  %v2757_v35 = vperm.slane %v740_v44, %v2467_v8  ;;  %v2764_v50 = vperm.slane %v752_v48, %v2467_v8  ;;  %3643 = vst [vmem:[#allocation10_spill] sm:$0xff] %v2772_v40  ;;  %v750_v59 = vsel %vm164_vm0, %v749_v47, %v700_v9 }
  0x6f   : > { %v738_v58 = vsel %vm164_vm0, %v737_v46, %v696_v4  ;;  %v2782_v62 = vperm.slane %v750_v59, %v2467_v8  ;;  %v797_v18 = vrot.slane %v2772_v40, 4  ;;  %v762_v9 = vsel %vm164_vm0, %v761_v6, %v720_v29 }
  0x70   : > { %v1320_v3 = vsel %vm164_vm0, %v1319_v61, %v2697_v45  ;;  %v1322_v45 = vsel %vm164_vm0, %v1306_v49, %v1321_v41  ;;  %v2779_v5 = vperm.slane %v738_v58, %v2467_v8  ;;  %v790_v49 = vsel %vm164_vm0, %v789_v60, %v2757_v35 }
  0x71   : > { %v2198_v13 = vpack.i.bf16 %v1320_v3, %v1312_v1  ;;  %v2203_v61 = vpack.i.bf16 %v1322_v45, %v1314_v54  ;;  %3645 = vst [vmem:[#allocation12_spill] sm:$0xff] %v2782_v62  ;;  %v795_v3 = vrot.slane %v2782_v62, 4  ;;  %v798_v4 = vsel %vm164_vm0, %v797_v18, %v2764_v50 }
  0x72   : > { %3644 = vst [vmem:[#allocation11_spill] sm:$0xff] %v2779_v5  ;;  %v787_v1 = vrot.slane %v2779_v5, 4  ;;  %v2213_v10 = vpack.i.bf16 %v798_v4, %v790_v49  ;;  %v2795_v15 = vperm.slane %v762_v9, %v2467_v8 }
  0x73   : > { %2199 = vrot.lane.b32.xlu1 %v2198_v13, %s2375_s8  ;;  %2194 = vrot.lane.b32.xlu2 %v2193_v19, %s2373_s6  ;;  %v774_v13 = vsel %vm164_vm0, %v773_v12, %v724_v30 }
  0x74   : > { %2204 = vrot.lane.b32.xlu0 %v2203_v61, %s2374_s7  ;;  %3646 = vst [vmem:[#allocation13_spill] sm:$0xff] %v2795_v15  ;;  %v2798_v19 = vperm.slane %v774_v13, %v2467_v8  ;;  %v788_v16 = vsel %vm164_vm0, %v2795_v15, %v787_v1 }
  0x76   : > { %3647 = vst [vmem:[#allocation14_spill] sm:$0xff] %v2798_v19  ;;  %v796_v17 = vsel %vm164_vm0, %v2798_v19, %v795_v3 }
  0x77   : > { %v2208_v20 = vpack.i.bf16 %v796_v17, %v788_v16 }
  0x7b   : > { %2214 = vrot.lane.b32.xlu1 %v2213_v10, %s2375_s8  ;;  %2209 = vrot.lane.b32.xlu2 %v2208_v20, %s2373_s6 }
  0x85   : > { %v2065_v14 = vpop.permute.xlu2 %2064 }
  0x86   : > { %v2067_v11 = vunpack.i.h.bf16 %v2065_v14  ;;  %v2066_v21 = vunpack.i.l.bf16 %v2065_v14 }
  0x88   : > { %v363_v26 = vrot.slane %v2067_v11, 4  ;;  %v351_v27 = vrot.slane %v2066_v21, 4 }
  0x8d   : > { %v2070_v23 = vpop.permute.xlu2 %2069 }
  0x8e   : > { %v2072_v24 = vunpack.i.h.bf16 %v2070_v23  ;;  %v2071_v25 = vunpack.i.l.bf16 %v2070_v23 }
  0x90   : > { %v2060_v28 = vpop.permute.xlu1 %2059  ;;  %v389_v31 = vrot.slane %v2072_v24, 4  ;;  %v377_v33 = vrot.slane %v2071_v25, 4 }
  0x91   : > { %v2062_v39 = vunpack.i.h.bf16 %v2060_v28  ;;  %v2061_v29 = vunpack.i.l.bf16 %v2060_v28  ;;  %v2075_v30 = vpop.permute.xlu0 %2074 }
  0x92   : > { %v2077_v43 = vunpack.i.h.bf16 %v2075_v30  ;;  %v2076_v32 = vunpack.i.l.bf16 %v2075_v30 }
  0x93   : > { %v364_v44 = vsel %vm164_vm0, %v363_v26, %v2062_v39  ;;  %v365_v34 = vrot.slane %v2062_v39, 4  ;;  %v352_v51 = vsel %vm164_vm0, %v351_v27, %v2061_v29  ;;  %v353_v36 = vrot.slane %v2061_v29, 4 }
  0x94   : > { %v370_v38 = vperm.slane %v364_v44, %v2465_v7  ;;  %v358_v41 = vperm.slane %v352_v51, %v2465_v7  ;;  %v387_v48 = vrot.slane %v2077_v43, 4  ;;  %v375_v57 = vrot.slane %v2076_v32, 4 }
  0x95   : > { %v366_v46 = vsel %vm164_vm0, %v2067_v11, %v365_v34  ;;  %v354_v47 = vsel %vm164_vm0, %v2066_v21, %v353_v36  ;;  %v390_v53 = vsel %vm164_vm0, %v2077_v43, %v389_v31  ;;  %v2813_v54 = vpop.permute.xlu2 %2084  ;;  %v378_v18 = vsel %vm164_vm0, %v2076_v32, %v377_v33 }
  0x96   : > { %v374_v45 = vperm.slane %v366_v46, %v2465_v7  ;;  %v399_v58 = vrot.slane %v370_v38, 4  ;;  %v362_v59 = vperm.slane %v354_v47, %v2465_v7  ;;  %v388_v60 = vsel %vm164_vm0, %v387_v48, %v2072_v24 }
  0x97   : > { %v398_v61 = vperm.slane %v390_v53, %v2465_v7  ;;  %v401_v49 = vrot.slane %v358_v41, 4  ;;  %v376_v1 = vsel %vm164_vm0, %v375_v57, %v2071_v25  ;;  %v394_v4 = vperm.slane %v388_v60, %v2465_v7 }
  0x98   : > { %v411_v6 = vrot.slane %v374_v45, 4  ;;  %v400_v12 = vsel %vm164_vm0, %v399_v58, %v358_v41  ;;  %v2822_v3 = vpop.permute.xlu1 %2079  ;;  %v386_v13 = vperm.slane %v378_v18, %v2465_v7  ;;  %v382_v10 = vperm.slane %v376_v1, %v2465_v7 }
  0x99   : > { %v435_v9 = vrot.slane %v398_v61, 4  ;;  %v423_v14 = vrot.slane %v394_v4, 4  ;;  %v2828_v16 = vperm.slane %v400_v12, %v2467_v8  ;;  %v402_v20 = vsel %vm164_vm0, %v370_v38, %v401_v49 }
  0x9a   : > { %v412_v17 = vsel %vm164_vm0, %v411_v6, %v362_v59  ;;  %v413_v11 = vrot.slane %v362_v59, 4  ;;  %v425_v39 = vrot.slane %v382_v10, 4  ;;  %v437_v29 = vrot.slane %v386_v13, 4 }
  0x9b   : > { %3648 = vst [vmem:[#allocation15_spill] sm:$0xff] %v2828_v16  ;;  %v2833_v21 = vperm.slane %v412_v17, %v2467_v8  ;;  %v424_v23 = vsel %vm164_vm0, %v423_v14, %v382_v10  ;;  %v436_v24 = vsel %vm164_vm0, %v435_v9, %v386_v13  ;;  %v449_v25 = vrot.slane %v2828_v16, 4 }
  0x9c   : > { %v2841_v27 = vperm.slane %v424_v23, %v2467_v8  ;;  %v2844_v28 = vperm.slane %v436_v24, %v2467_v8  ;;  %v410_v31 = vperm.slane %v402_v20, %v2467_v8  ;;  %v414_v33 = vsel %vm164_vm0, %v374_v45, %v413_v11 }
  0x9d   : > { %3649 = vst [vmem:[#allocation16_spill] sm:$0xff] %v2833_v21  ;;  %v2838_v26 = vpop.permute.xlu2 %2114  ;;  %v457_v30 = vrot.slane %v2833_v21, 4  ;;  %v422_v51 = vperm.slane %v414_v33, %v2467_v8  ;;  %v426_v38 = vsel %vm164_vm0, %v394_v4, %v425_v39  ;;  %v438_v41 = vsel %vm164_vm0, %v398_v61, %v437_v29 }
  0x9e   : > { %3650 = vst [vmem:[#allocation17_spill] sm:$0xff] %v2841_v27  ;;  %v450_v32 = vsel %vm164_vm0, %v2841_v27, %v449_v25  ;;  %v453_v48 = vrot.slane %v410_v31, 4  ;;  %v2086_v57 = vunpack.i.l.bf16 %v2813_v54  ;;  %v434_v46 = vperm.slane %v426_v38, %v2467_v8 }
  0x9f   : > { %3651 = vst [vmem:[#allocation18_spill] sm:$0xff] %v2844_v28  ;;  %v458_v34 = vsel %vm164_vm0, %v2844_v28, %v457_v30  ;;  %v446_v47 = vperm.slane %v438_v41, %v2467_v8  ;;  %v461_v53 = vrot.slane %v422_v51, 4  ;;  %v2082_v45 = vunpack.i.h.bf16 %v2822_v3 }
  0xa0   : > { %v2848_v43 = vpop.permute.xlu0 %2089  ;;  %v2218_v36 = vpack.i.bf16 %v458_v34, %v450_v32  ;;  %v454_v59 = vsel %vm164_vm0, %v434_v46, %v453_v48  ;;  %v451_v18 = vrot.slane %v434_v46, 4  ;;  %v1591_v49 = vrot.slane %v2086_v57, 4 }
  0xa1   : > { %v2853_v44 = vpop.permute.xlu1 %2104  ;;  %v462_v60 = vsel %vm164_vm0, %v446_v47, %v461_v53  ;;  %v459_v6 = vrot.slane %v446_v47, 4  ;;  %v1593_v14 = vrot.slane %v2082_v45, 4  ;;  %v3616_v24 = vunpack.i.l.bf16 %v2822_v3 }
  0xa2   : > { %2219 = vrot.lane.b32.xlu1 %v2218_v36, %s2373_s6  ;;  %v2228_v61 = vpack.i.bf16 %v462_v60, %v454_v59  ;;  %v452_v1 = vsel %vm164_vm0, %v451_v18, %v410_v31  ;;  %v2087_v25 = vunpack.i.h.bf16 %v2813_v54  ;;  %v1592_v29 = vsel %vm164_vm0, %v1591_v49, %v2082_v45 }
  0xa3   : > { %v460_v4 = vsel %vm164_vm0, %v459_v6, %v422_v51  ;;  %v1594_v32 = vsel %vm164_vm0, %v2086_v57, %v1593_v14  ;;  %v2116_v33 = vunpack.i.l.bf16 %v2838_v26  ;;  %v2884_v54 = vrot.slane %v3616_v24, 4 }
  0xa4   : > { %2229 = vrot.lane.b32.xlu0 %v2228_v61, %s2374_s7  ;;  %v2223_v10 = vpack.i.bf16 %v460_v4, %v452_v1  ;;  %v1605_v38 = vrot.slane %v2087_v25, 4  ;;  %v2887_v41 = vperm.slane %v1592_v29, %v2465_v7  ;;  %v2891_v57 = vperm.slane %v1594_v32, %v2465_v7 }
  0xa5   : > { %v2130_v58 = vpop.permute.xlu2 %2129  ;;  %v2117_v46 = vunpack.i.h.bf16 %v2838_v26 }
  0xa6   : > { %v2132_v12 = vunpack.i.h.bf16 %v2130_v58  ;;  %v2131_v13 = vunpack.i.l.bf16 %v2130_v58  ;;  %2224 = vrot.lane.b32.xlu2 %v2223_v10, %s2375_s8  ;;  %v1579_v58 = vrot.slane %v2116_v33, 4  ;;  %v1627_v10 = vrot.slane %v2887_v41, 4 }
  0xa8   : > { %v2869_v9 = vpop.permute.xlu0 %2094  ;;  %v1395_v23 = vrot.slane %v2132_v12, 4  ;;  %v1397_v39 = vrot.slane %v2131_v13, 4 }
  0xa9   : > { %v2110_v17 = vpop.permute.xlu1 %2109 }
  0xaa   : > { %v2112_v20 = vunpack.i.h.bf16 %v2110_v17  ;;  %v2111_v11 = vunpack.i.l.bf16 %v2110_v17  ;;  %v1396_v51 = vsel %vm164_vm0, %v1395_v23, %v2131_v13  ;;  %v1398_v48 = vsel %vm164_vm0, %v2132_v12, %v1397_v39 }
  0xab   : > { %v2899_v18 = vperm.slane %v1396_v51, %v2465_v7  ;;  %v2902_v61 = vperm.slane %v1398_v48, %v2465_v7 }
  0xac   : > { %v1407_v30 = vrot.slane %v2112_v20, 4  ;;  %v1409_v31 = vrot.slane %v2111_v11, 4 }
  0xad   : > { %v2880_v36 = vpop.permute.xlu2 %2144 }
  0xae   : > { %v1408_v34 = vsel %vm164_vm0, %v1407_v30, %v2111_v11  ;;  %v1410_v47 = vsel %vm164_vm0, %v2112_v20, %v1409_v31  ;;  %v3617_v26 = vunpack.i.h.bf16 %v2880_v36  ;;  %v2146_v14 = vunpack.i.l.bf16 %v2880_v36 }
  0xaf   : > { %v2896_v53 = vperm.slane %v1408_v34, %v2465_v7  ;;  %v2906_v1 = vperm.slane %v1410_v47, %v2465_v7  ;;  %v1617_v20 = vrot.slane %v2117_v46, 4 }
  0xb0   : > { %v2100_v45 = vpop.permute.xlu0 %2099 }
  0xb1   : > { %v2102_v59 = vunpack.i.h.bf16 %v2100_v45  ;;  %v2101_v60 = vunpack.i.l.bf16 %v2100_v45  ;;  %v2125_v6 = vpop.permute.xlu1 %2124  ;;  %v1443_v11 = vrot.slane %v2896_v53, 4  ;;  %v1455_v48 = vrot.slane %v2906_v1, 4 }
  0xb2   : > { %v2127_v12 = vunpack.i.h.bf16 %v2125_v6  ;;  %v2126_v49 = vunpack.i.l.bf16 %v2125_v6  ;;  %v1059_v45 = vrot.slane %v3617_v26, 4 }
  0xb3   : > { %v1581_v4 = vrot.slane %v2102_v59, 4  ;;  %v1603_v13 = vrot.slane %v2101_v60, 4  ;;  %v1580_v23 = vsel %vm164_vm0, %v1579_v58, %v2102_v59  ;;  %v1606_v39 = vsel %vm164_vm0, %v2101_v60, %v1605_v38 }
  0xb4   : > { %v1419_v29 = vrot.slane %v2127_v12, 4  ;;  %v1421_v30 = vrot.slane %v2126_v49, 4  ;;  %v1081_v58 = vrot.slane %v2146_v14, 4  ;;  %v1586_v38 = vperm.slane %v1580_v23, %v2465_v7 }
  0xb5   : > { %v1582_v31 = vsel %vm164_vm0, %v2116_v33, %v1581_v4  ;;  %v1604_v32 = vsel %vm164_vm0, %v1603_v13, %v2087_v25  ;;  %v2924_v59 = vperm.slane %v1606_v39, %v2465_v7  ;;  %v2928_v25 = vsel %vm164_vm0, %v1443_v11, %v2899_v18  ;;  %v2931_v6 = vpop.permute.xlu2 %2159 }
  0xb6   : > { %v1420_v47 = vsel %vm164_vm0, %v1419_v29, %v2126_v49  ;;  %v1422_v33 = vsel %vm164_vm0, %v2127_v12, %v1421_v30  ;;  %v2934_v49 = vperm.slane %v1582_v31, %v2465_v7  ;;  %v2937_v4 = vperm.slane %v1604_v32, %v2465_v7 }
  0xb7   : > { %v2940_v39 = vperm.slane %v1420_v47, %v2465_v7  ;;  %v2944_v12 = vperm.slane %v1422_v33, %v2465_v7  ;;  %v2161_v34 = vunpack.i.l.bf16 %v2931_v6  ;;  %v2949_v32 = vsel %vm164_vm0, %v1627_v10, %v1586_v38 }
  0xb8   : > { %v2120_v60 = vpop.permute.xlu0 %2119  ;;  %v1641_v21 = vrot.slane %v2934_v49, 4  ;;  %v3652_v62 = vunpack.i.h.bf16 %v2931_v6 }
  0xb9   : > { %v2122_v13 = vunpack.i.h.bf16 %v2120_v60  ;;  %v2121_v23 = vunpack.i.l.bf16 %v2120_v60  ;;  %v2140_v29 = vpop.permute.xlu1 %2139  ;;  %v2953_v60 = vsel %vm164_vm0, %v1455_v48, %v2902_v61  ;;  %v3657_v0 = vrot.slane %v2940_v39, 4 }
  0xba   : > { %v2142_v24 = vunpack.i.h.bf16 %v2140_v29  ;;  %v2141_v11 = vunpack.i.l.bf16 %v2140_v29  ;;  %v1629_v29 = vrot.slane %v1586_v38, 4  ;;  %v2965_v38 = vrot.slane %v3652_v62, 4 }
  0xbb   : > { %v1615_v30 = vrot.slane %v2121_v23, 4  ;;  %v1618_v31 = vsel %vm164_vm0, %v2121_v23, %v1617_v20  ;;  %v1071_v47 = vrot.slane %v2122_v13, 4  ;;  %v1653_v20 = vrot.slane %v2937_v4, 4 }
  0xbc   : > { %v1083_v17 = vrot.slane %v2142_v24, 4  ;;  %v1082_v33 = vsel %vm164_vm0, %v1081_v58, %v2142_v24  ;;  %v1069_v51 = vrot.slane %v2141_v11, 4  ;;  %v1665_v23 = vrot.slane %v2924_v59, 4 }
  0xbd   : > { %v1616_v26 = vsel %vm164_vm0, %v1615_v30, %v2117_v46  ;;  %v1626_v10 = vperm.slane %v1618_v31, %v2465_v7  ;;  %v1093_v46 = vrot.slane %v2161_v34, 4  ;;  %v2970_v30 = vperm.slane %v1082_v33, %v2465_v7 }
  0xbe   : > { %v1622_v24 = vperm.slane %v1616_v26, %v2465_v7  ;;  %v1084_v58 = vsel %vm164_vm0, %v2146_v14, %v1083_v17  ;;  %v1072_v5 = vsel %vm164_vm0, %v2141_v11, %v1071_v47  ;;  %v1070_v31 = vsel %vm164_vm0, %v1069_v51, %v2122_v13 }
  0xbf   : > { %v1630_v62 = vsel %vm164_vm0, %v2887_v41, %v1629_v29  ;;  %v1663_v19 = vrot.slane %v1626_v10, 4  ;;  %v1666_v15 = vsel %vm164_vm0, %v1626_v10, %v1665_v23  ;;  %v2978_v14 = vperm.slane %v1084_v58, %v2465_v7 }
  0xc0   : > { %v2135_v28 = vpop.permute.xlu0 %2134  ;;  %v2981_v17 = vperm.slane %v1072_v5, %v2465_v7  ;;  %v1651_v51 = vrot.slane %v1622_v24, 4  ;;  %v2985_v13 = vperm.slane %v1070_v31, %v2465_v7  ;;  %v1642_v10 = vsel %vm164_vm0, %v2891_v57, %v1641_v21  ;;  %v2175_v31 = vpop.permute.xlu2 %2174 }
  0xc1   : > { %v2137_v16 = vunpack.i.h.bf16 %v2135_v28  ;;  %v2136_v27 = vunpack.i.l.bf16 %v2135_v28  ;;  %v2155_v48 = vpop.permute.xlu1 %2154  ;;  %v2995_v28 = vperm.slane %v1666_v15, %v2467_v8  ;;  %v3011_v15 = vperm.slane %v1642_v10, %v2467_v8 }
  0xc2   : > { %v2157_v26 = vunpack.i.h.bf16 %v2155_v48  ;;  %v2156_v37 = vunpack.i.l.bf16 %v2155_v48  ;;  %v1117_v42 = vrot.slane %v2981_v17, 4  ;;  %v3655_v10 = vrot.slane %v2891_v57, 4 }
  0xc3   : > { %v1431_v11 = vrot.slane %v2137_v16, 4  ;;  %v1433_v47 = vrot.slane %v2136_v27, 4 }
  0xc4   : > { %v1095_v41 = vrot.slane %v2157_v26, 4  ;;  %v1094_v29 = vsel %vm164_vm0, %v1093_v46, %v2157_v26  ;;  %v1057_v33 = vrot.slane %v2156_v37, 4  ;;  %v1060_v23 = vsel %vm164_vm0, %v2156_v37, %v1059_v45 }
  0xc5   : > { %v1432_v5 = vsel %vm164_vm0, %v1431_v11, %v2136_v27  ;;  %v1434_v48 = vsel %vm164_vm0, %v2137_v16, %v1433_v47  ;;  %v3000_v46 = vperm.slane %v1630_v62, %v2467_v8  ;;  %v1654_v37 = vsel %vm164_vm0, %v1622_v24, %v1653_v20 }
  0xc6   : > { %v1096_v58 = vsel %vm164_vm0, %v2161_v34, %v1095_v41  ;;  %v3005_v27 = vperm.slane %v1094_v29, %v2465_v7  ;;  %v3008_v16 = vperm.slane %v1060_v23, %v2465_v7  ;;  %v3014_v45 = vperm.slane %v1432_v5, %v2465_v7 }
  0xc7   : > { %v3017_v62 = vperm.slane %v1434_v48, %v2465_v7  ;;  %v3020_v20 = vperm.slane %v1096_v58, %v2465_v7  ;;  %v3653_v24 = vunpack.i.h.bf16 %v2880_v36  ;;  %v3026_v41 = vperm.slane %v1654_v37, %v2467_v8 }
  0xc8   : > { %v2150_v34 = vpop.permute.xlu0 %2149  ;;  %v1687_v29 = vrot.slane %v2995_v28, 4  ;;  %v3031_v23 = vperm.slane %v2949_v32, %v2467_v8  ;;  %v1640_v5 = vsel %vm164_vm0, %v3655_v10, %v2934_v49  ;;  %v1652_v36 = vsel %vm164_vm0, %v1651_v51, %v2937_v4 }
  0xc9   : > { %v1058_v26 = vsel %vm164_vm0, %v1057_v33, %v3653_v24  ;;  %v2152_v11 = vunpack.i.h.bf16 %v2150_v34  ;;  %v2151_v47 = vunpack.i.l.bf16 %v2150_v34  ;;  %v1664_v33 = vsel %vm164_vm0, %v1663_v19, %v2924_v59  ;;  %v2170_v48 = vpop.permute.xlu1 %2169 }
  0xca   : > { %3654 = vst [vmem:[#allocation19_spill] sm:$0xff] %v3031_v23  ;;  %v1679_v24 = vrot.slane %v3026_v41, 4  ;;  %v1688_v32 = vsel %vm164_vm0, %v1687_v29, %v3011_v15  ;;  %v3046_v57 = vperm.slane %v1640_v5, %v2467_v8  ;;  %v3049_v49 = vperm.slane %v1652_v36, %v2467_v8 }
  0xcb   : > { %v885_v37 = vrot.slane %v2152_v11, 4  ;;  %v887_v34 = vrot.slane %v2151_v47, 4  ;;  %v3052_v4 = vperm.slane %v1664_v33, %v2467_v8  ;;  %v1677_v51 = vrot.slane %v3031_v23, 4 }
  0xcc   : > { %3656 = vst [vmem:[#allocation20_spill] sm:$0xff] %v3046_v57  ;;  %v1680_v59 = vsel %vm164_vm0, %v1679_v24, %v3000_v46  ;;  %v2172_v10 = vunpack.i.h.bf16 %v2170_v48  ;;  %v1467_v29 = vrot.slane %v3014_v45, 4  ;;  %v3060_v5 = vperm.slane %v1058_v26, %v2465_v7 }
  0xcd   : > { %v886_v19 = vsel %vm164_vm0, %v885_v37, %v2151_v47  ;;  %v3064_v36 = vsel %vm164_vm0, %v1117_v42, %v3008_v16  ;;  %v2238_v33 = vpack.i.bf16 %v1688_v32, %v1680_v59  ;;  %v1678_v47 = vsel %vm164_vm0, %v3049_v49, %v1677_v51 }
  0xce   : > { %v3067_v58 = vperm.slane %v886_v19, %v2465_v7  ;;  %v1685_v37 = vrot.slane %v3046_v57, 4  ;;  %v873_v24 = vrot.slane %v2172_v10, 4  ;;  %v1470_v26 = vsel %vm164_vm0, %v3014_v45, %v3657_v0 }
  0xcf   : > { %v888_v63 = vsel %vm164_vm0, %v2152_v11, %v887_v34  ;;  %2239 = vrot.lane.b32.xlu1 %v2238_v33, %s2375_s8  ;;  %v2171_v42 = vunpack.i.l.bf16 %v2170_v48  ;;  %v2177_v32 = vunpack.i.h.bf16 %v2175_v31  ;;  %v1479_v19 = vrot.slane %v3017_v62, 4 }
  0xd0   : > { %v2165_v21 = vpop.permute.xlu0 %2164  ;;  %v1686_v59 = vsel %vm164_vm0, %v3052_v4, %v1685_v37  ;;  %v2176_v51 = vunpack.i.l.bf16 %v2175_v31  ;;  %v3083_v0 = vperm.slane %v888_v63, %v2465_v7  ;;  %v921_v45 = vrot.slane %v3067_v58, 4 }
  0xd1   : > { %v2167_v52 = vunpack.i.h.bf16 %v2165_v21  ;;  %v2233_v55 = vpack.i.bf16 %v1686_v59, %v1678_v47  ;;  %v874_v57 = vsel %vm164_vm0, %v873_v24, %v2171_v42  ;;  %v875_v23 = vrot.slane %v2171_v42, 4 }
  0xd2   : > { %v909_v40 = vrot.slane %v2177_v32, 4  ;;  %v911_v11 = vrot.slane %v2176_v51, 4  ;;  %v2166_v48 = vunpack.i.l.bf16 %v2165_v21  ;;  %v3658_v34 = vrot.slane %v2944_v12, 4 }
  0xd3   : > { %2234 = vrot.lane.b32.xlu0 %v2233_v55, %s2373_s6  ;;  %v876_v47 = vsel %vm164_vm0, %v2172_v10, %v875_v23  ;;  %v3094_v37 = vperm.slane %v874_v57, %v2465_v7  ;;  %v897_v42 = vrot.slane %v2167_v52, 4  ;;  %v3659_v59 = vrot.slane %v2970_v30, 4 }
  0xd4   : > { %v1482_v33 = vsel %vm164_vm0, %v3017_v62, %v3658_v34  ;;  %v910_v21 = vsel %vm164_vm0, %v909_v40, %v2176_v51  ;;  %v912_v55 = vsel %vm164_vm0, %v2177_v32, %v911_v11  ;;  %v3108_v23 = vperm.slane %v2928_v25, %v2467_v8 }
  0xd5   : > { %v3103_v62 = vsel %vm164_vm0, %v3005_v27, %v3659_v59  ;;  %v3112_v57 = vperm.slane %v2953_v60, %v2467_v8  ;;  %v933_v10 = vrot.slane %v3083_v0, 4  ;;  %v3116_v40 = vperm.slane %v876_v47, %v2465_v7 }
  0xd6   : > { %v3120_v51 = vsel %vm164_vm0, %v921_v45, %v3094_v37  ;;  %v899_v34 = vrot.slane %v2166_v48, 4  ;;  %v3124_v11 = vperm.slane %v910_v21, %v2465_v7  ;;  %v1468_v25 = vsel %vm164_vm0, %v1467_v29, %v2940_v39 }
  0xd7   : > { %3660 = vst [vmem:[#allocation21_spill] sm:$0xff] %v3112_v57  ;;  %v1480_v60 = vsel %vm164_vm0, %v1479_v19, %v2944_v12  ;;  %v3131_v59 = vperm.slane %v912_v55, %v2465_v7  ;;  %v898_v47 = vsel %vm164_vm0, %v897_v42, %v2166_v48  ;;  %v3135_v45 = vperm.slane %v1468_v25, %v2467_v8  ;;  %v2185_v48 = vpop.permute.xlu1 %2184 }
  0xd8   : > { %v3138_v24 = vperm.slane %v1480_v60, %v2467_v8  ;;  %v1493_v21 = vrot.slane %v3108_v23, 4  ;;  %v1501_v32 = vrot.slane %v3112_v57, 4  ;;  %v3661_v39 = vrot.slane %v2899_v18, 4  ;;  %v2190_v60 = vpop.permute.xlu2 %2189 }
  0xd9   : > { %v3662_v29 = vrot.slane %v2902_v61, 4  ;;  %v3152_v42 = vsel %vm164_vm0, %v933_v10, %v3116_v40  ;;  %v900_v55 = vsel %vm164_vm0, %v2167_v52, %v899_v34  ;;  %v3169_v10 = vperm.slane %v1482_v33, %v2467_v8 }
  0xda   : > { %v1446_v12 = vsel %vm164_vm0, %v2896_v53, %v3661_v39  ;;  %v1494_v53 = vsel %vm164_vm0, %v3135_v45, %v1493_v21  ;;  %v1502_v61 = vsel %vm164_vm0, %v3138_v24, %v1501_v32  ;;  %v1681_v34 = vrot.slane %v3000_v46, 4 }
  0xdb   : > { %v1458_v19 = vsel %vm164_vm0, %v2906_v1, %v3662_v29  ;;  %v3156_v25 = vperm.slane %v1446_v12, %v2467_v8  ;;  %v3166_v1 = vperm.slane %v1470_v26, %v2467_v8  ;;  %v2243_v52 = vpack.i.bf16 %v1502_v61, %v1494_v53  ;;  %v2180_v53 = vpop.permute.xlu0 %2179 }
  0xdc   : > { %v3159_v18 = vperm.slane %v1458_v19, %v2467_v8  ;;  %v1689_v39 = vrot.slane %v3011_v15, 4  ;;  %v2187_v12 = vunpack.i.h.bf16 %v2185_v48  ;;  %v1503_v19 = vrot.slane %v3169_v10, 4 }
  0xdd   : > { %v1495_v29 = vrot.slane %v3166_v1, 4  ;;  %v2186_v21 = vunpack.i.l.bf16 %v2185_v48  ;;  %v2192_v63 = vunpack.i.h.bf16 %v2190_v60  ;;  %2244 = vrot.lane.b32.xlu2 %v2243_v52, %s2373_s6  ;;  %v1682_v26 = vsel %vm164_vm0, %v3026_v41, %v1681_v34 }
  0xde   : > { %v1690_v33 = vsel %vm164_vm0, %v2995_v28, %v1689_v39  ;;  %v535_v46 = vrot.slane %v2187_v12, 4  ;;  %v1504_v61 = vsel %vm164_vm0, %v1503_v19, %v3159_v18  ;;  %v538_v32 = vsel %vm164_vm0, %v2187_v12, %v2884_v54 }
  0xdf   : > { %v1496_v15 = vsel %vm164_vm0, %v1495_v29, %v3156_v25  ;;  %v2248_v48 = vpack.i.bf16 %v1690_v33, %v1682_v26  ;;  %v3188_v52 = vperm.slane %v898_v47, %v2465_v7  ;;  %v3663_v41 = vunpack.i.l.bf16 %v2822_v3 }
  0xe0   : > { %v2253_v31 = vpack.i.bf16 %v1504_v61, %v1496_v15  ;;  %v571_v34 = vrot.slane %v2192_v63, 4  ;;  %v3194_v39 = vperm.slane %v900_v55, %v2465_v7  ;;  %v559_v29 = vrot.slane %v2186_v21, 4 }
  0xe1   : > { %v536_v28 = vsel %vm164_vm0, %v535_v46, %v3663_v41  ;;  %2249 = vrot.lane.b32.xlu0 %v2248_v48, %s2374_s7  ;;  %v2191_v19 = vunpack.i.l.bf16 %v2190_v60  ;;  %v2182_v26 = vunpack.i.h.bf16 %v2180_v53  ;;  %v945_v33 = vrot.slane %v3124_v11, 4 }
  0xe2   : > { %2254 = vrot.lane.b32.xlu1 %v2253_v31, %s2375_s8  ;;  %v3200_v54 = vperm.slane %v538_v32, %v2465_v7  ;;  %v2181_v47 = vunpack.i.l.bf16 %v2180_v53  ;;  %v3664_v3 = vrot.slane %v2985_v13, 4  ;;  %v957_v55 = vrot.slane %v3131_v59, 4 }
  0xe3   : > { %v3208_v46 = vperm.slane %v536_v28, %v2465_v7  ;;  %v572_v60 = vsel %vm164_vm0, %v571_v34, %v2191_v19  ;;  %v573_v15 = vrot.slane %v2191_v19, 4  ;;  %v561_v61 = vrot.slane %v2182_v26, 4 }
  0xe4   : > { %v1106_v12 = vsel %vm164_vm0, %v3664_v3, %v3060_v5  ;;  %v547_v48 = vrot.slane %v2181_v47, 4  ;;  %v3213_v31 = vperm.slane %v3064_v36, %v2467_v8  ;;  %v3665_v32 = vrot.slane %v3005_v27, 4 }
  0xe5   : > { %v574_v41 = vsel %vm164_vm0, %v2192_v63, %v573_v15  ;;  %v3221_v3 = vperm.slane %v572_v60, %v2465_v7  ;;  %v560_v28 = vsel %vm164_vm0, %v559_v29, %v2182_v26  ;;  %v3225_v34 = vperm.slane %v1106_v12, %v2467_v8 }
  0xe6   : > { %v1130_v53 = vsel %vm164_vm0, %v3665_v32, %v2970_v30  ;;  %v947_v19 = vrot.slane %v3188_v52, 4  ;;  %v959_v36 = vrot.slane %v3194_v39, 4  ;;  %v562_v27 = vsel %vm164_vm0, %v2186_v21, %v561_v61 }
  0xe7   : > { %v585_v30 = vrot.slane %v3208_v46, 4  ;;  %v3666_v63 = vunpack.i.h.bf16 %v2931_v6  ;;  %v550_v29 = vsel %vm164_vm0, %v2181_v47, %v2965_v38  ;;  %v3667_v26 = vrot.slane %v3020_v20, 4 }
  0xe8   : > { %v3242_v15 = vperm.slane %v574_v41, %v2465_v7  ;;  %v3245_v32 = vperm.slane %v560_v28, %v2465_v7  ;;  %v3248_v21 = vperm.slane %v1130_v53, %v2467_v8  ;;  %v607_v61 = vrot.slane %v3221_v3, 4 }
  0xe9   : > { %v548_v60 = vsel %vm164_vm0, %v547_v48, %v3666_v63  ;;  %v1142_v12 = vsel %vm164_vm0, %v3667_v26, %v2978_v14  ;;  %v3255_v38 = vperm.slane %v562_v27, %v2465_v7  ;;  %v1155_v47 = vrot.slane %v3225_v34, 4 }
  0xea   : > { %v3251_v6 = vperm.slane %v1142_v12, %v2467_v8  ;;  %v1163_v48 = vrot.slane %v3213_v31, 4  ;;  %v3260_v41 = vperm.slane %v548_v60, %v2465_v7  ;;  %v3263_v28 = vperm.slane %v550_v29, %v2465_v7 }
  0xeb   : > { %v3668_v53 = vrot.slane %v3060_v5, 4  ;;  %v3669_v26 = vrot.slane %v3008_v16, 4  ;;  %v1156_v12 = vsel %vm164_vm0, %v3248_v21, %v1155_v47  ;;  %v1140_v5 = vperm.slane %v3103_v62, %v2467_v8 }
  0xec   : > { %v1164_v60 = vsel %vm164_vm0, %v3251_v6, %v1163_v48  ;;  %v3290_v48 = vperm.slane %v3120_v51, %v2467_v8  ;;  %v946_v62 = vsel %vm164_vm0, %v945_v33, %v3188_v52 }
  0xed   : > { %v1108_v63 = vsel %vm164_vm0, %v2985_v13, %v3668_v53  ;;  %v1120_v27 = vsel %vm164_vm0, %v2981_v17, %v3669_v26  ;;  %v2263_v29 = vpack.i.bf16 %v1164_v60, %v1156_v12  ;;  %v3670_v13 = vrot.slane %v2978_v14, 4 }
  0xee   : > { %v1116_v57 = vperm.slane %v1108_v63, %v2467_v8  ;;  %v1128_v7 = vperm.slane %v1120_v27, %v2467_v8  ;;  %v1497_v17 = vrot.slane %v3156_v25, 4  ;;  %v1505_v53 = vrot.slane %v3159_v18, 4 }
  0xef   : > { %v1144_v16 = vsel %vm164_vm0, %v3020_v20, %v3670_v13  ;;  %v3294_v63 = vperm.slane %v3152_v42, %v2467_v8  ;;  %2264 = vrot.lane.b32.xlu2 %v2263_v29, %s2373_s6  ;;  %v1157_v14 = vrot.slane %v1140_v5, 4  ;;  %v958_v25 = vsel %vm164_vm0, %v957_v55, %v3194_v39 }
  0xf0   : > { %v1152_v47 = vperm.slane %v1144_v16, %v2467_v8  ;;  %v1498_v20 = vsel %vm164_vm0, %v3166_v1, %v1497_v17  ;;  %v1506_v51 = vsel %vm164_vm0, %v3169_v10, %v1505_v53  ;;  %v3306_v26 = vperm.slane %v946_v62, %v2467_v8 }
  0xf1   : > { %v3309_v42 = vperm.slane %v958_v25, %v2467_v8  ;;  %v1158_v27 = vsel %vm164_vm0, %v1157_v14, %v1116_v57  ;;  %v2258_v12 = vpack.i.bf16 %v1506_v51, %v1498_v20  ;;  %v971_v1 = vrot.slane %v3290_v48, 4 }
  0xf2   : > { %v1165_v18 = vrot.slane %v1152_v47, 4  ;;  %v979_v33 = vrot.slane %v3294_v63, 4  ;;  %v619_v60 = vrot.slane %v3242_v15, 4  ;;  %v583_v55 = vrot.slane %v3260_v41, 4 }
  0xf3   : > { %v1159_v10 = vrot.slane %v1116_v57, 4  ;;  %2259 = vrot.lane.b32.xlu0 %v2258_v12, %s2374_s7  ;;  %v972_v16 = vsel %vm164_vm0, %v3306_v26, %v971_v1  ;;  %v1167_v53 = vrot.slane %v1128_v7, 4  ;;  %v595_v14 = vrot.slane %v3263_v28, 4 }
  0xf4   : > { %v1166_v29 = vsel %vm164_vm0, %v1165_v18, %v1128_v7  ;;  %v980_v17 = vsel %vm164_vm0, %v3309_v42, %v979_v33  ;;  %v3671_v62 = vrot.slane %v3094_v37, 4  ;;  %v3672_v57 = vrot.slane %v3116_v40, 4 }
  0xf5   : > { %v2268_v13 = vpack.i.bf16 %v1166_v29, %v1158_v27  ;;  %v2273_v20 = vpack.i.bf16 %v980_v17, %v972_v16  ;;  %v609_v51 = vrot.slane %v3245_v32, 4  ;;  %v1160_v27 = vsel %vm164_vm0, %v1140_v5, %v1159_v10 }
  0xf6   : > { %v924_v25 = vsel %vm164_vm0, %v3067_v58, %v3671_v62  ;;  %v936_v18 = vsel %vm164_vm0, %v3083_v0, %v3672_v57  ;;  %v948_v37 = vsel %vm164_vm0, %v3124_v11, %v947_v19  ;;  %v960_v0 = vsel %vm164_vm0, %v3131_v59, %v959_v36 }
  0xf7   : > { %2269 = vrot.lane.b32.xlu1 %v2268_v13, %s2375_s8  ;;  %v932_v7 = vperm.slane %v924_v25, %v2467_v8  ;;  %v944_v58 = vperm.slane %v936_v18, %v2467_v8  ;;  %v956_v40 = vperm.slane %v948_v37, %v2467_v8  ;;  %v584_v12 = vsel %vm164_vm0, %v583_v55, %v3208_v46 }
  0xf8   : > { %v621_v5 = vrot.slane %v3255_v38, 4  ;;  %2274 = vrot.lane.b32.xlu2 %v2273_v20, %s2373_s6  ;;  %v1168_v52 = vsel %vm164_vm0, %v1152_v47, %v1167_v53  ;;  %v968_v11 = vperm.slane %v960_v0, %v2467_v8  ;;  %v3352_v19 = vperm.slane %v584_v12, %v2467_v8 }
  0xf9   : > { %v973_v1 = vrot.slane %v956_v40, 4  ;;  %v596_v39 = vsel %vm164_vm0, %v595_v14, %v3200_v54  ;;  %v608_v59 = vsel %vm164_vm0, %v607_v61, %v3245_v32  ;;  %v620_v36 = vsel %vm164_vm0, %v619_v60, %v3255_v38 }
  0xfa   : > { %v2278_v33 = vpack.i.bf16 %v1168_v52, %v1160_v27  ;;  %v981_v55 = vrot.slane %v968_v11, 4  ;;  %v975_v47 = vrot.slane %v932_v7, 4  ;;  %v3363_v29 = vperm.slane %v596_v39, %v2467_v8 }
  0xfb   : > { %v974_v10 = vsel %vm164_vm0, %v973_v1, %v932_v7  ;;  %v983_v13 = vrot.slane %v944_v58, 4  ;;  %v3367_v16 = vperm.slane %v608_v59, %v2467_v8  ;;  %v3370_v17 = vperm.slane %v620_v36, %v2467_v8 }
  0xfc   : > { %2279 = vrot.lane.b32.xlu0 %v2278_v33, %s2374_s7  ;;  %v982_v32 = vsel %vm164_vm0, %v981_v55, %v944_v58  ;;  %v633_v61 = vrot.slane %v3352_v19, 4  ;;  %v641_v38 = vrot.slane %v3363_v29, 4  ;;  %v586_v60 = vsel %vm164_vm0, %v3260_v41, %v585_v30  ;;  %v3674_v33 = vld [vmem:[#allocation10_spill] sm:$0xff] }
  0xfd   : > { %v2283_v53 = vpack.i.bf16 %v982_v32, %v974_v10  ;;  %v976_v14 = vsel %vm164_vm0, %v956_v40, %v975_v47  ;;  %v984_v20 = vsel %vm164_vm0, %v968_v11, %v983_v13  ;;  %v594_v62 = vperm.slane %v586_v60, %v2467_v8  ;;  %v3675_v13 = vld [vmem:[#allocation19_spill] sm:$0xff]  ;;  %v3677_v60 = vld [vmem:[#allocation5_spill] sm:$0xff] }
  0xfe   : > { %v634_v25 = vsel %vm164_vm0, %v3367_v16, %v633_v61  ;;  %v642_v57 = vsel %vm164_vm0, %v3370_v17, %v641_v38  ;;  %v3673_v18 = vrot.slane %v3200_v54, 4  ;;  %v610_v30 = vsel %vm164_vm0, %v3221_v3, %v609_v51  ;;  %v3676_v61 = vld [vmem:[#allocation20_spill] sm:$0xff] }
  0xff   : > { %2284 = vrot.lane.b32.xlu1 %v2283_v53, %s2375_s8  ;;  %v2293_v41 = vpack.i.bf16 %v642_v57, %v634_v25  ;;  %v618_v7 = vperm.slane %v610_v30, %v2467_v8  ;;  %v622_v37 = vsel %vm164_vm0, %v3242_v15, %v621_v5  ;;  %v260_v58 = vrot.slane %v2537_v56, 4  ;;  %v3678_v53 = vld [vmem:[#allocation4_spill] sm:$0xff]  ;;  %v3679_v30 = vld [vmem:[#allocation21_spill] sm:$0xff] }
 0x100   : > { %v598_v46 = vsel %vm164_vm0, %v3263_v28, %v3673_v18  ;;  %v268_v54 = vrot.slane %v2546_v2, 4  ;;  %v2092_v40 = vunpack.i.h.bf16 %v2848_v43  ;;  %v630_v28 = vperm.slane %v622_v37, %v2467_v8 }
 0x101   : > { %v606_v27 = vperm.slane %v598_v46, %v2467_v8  ;;  %2294 = vrot.lane.b32.xlu2 %v2293_v41, %s2373_s6  ;;  %v635_v3 = vrot.slane %v618_v7, 4  ;;  %v791_v51 = vrot.slane %v2757_v35, 4  ;;  %v799_v0 = vrot.slane %v2764_v50, 4 }
 0x102   : > { %v637_v12 = vrot.slane %v594_v62, 4  ;;  %v2091_v52 = vunpack.i.l.bf16 %v2848_v43  ;;  %v2288_v11 = vpack.i.bf16 %v984_v20, %v976_v14  ;;  %v643_v15 = vrot.slane %v630_v28, 4 }
 0x103   : > { %v645_v5 = vrot.slane %v606_v27, 4  ;;  %v2107_v56 = vunpack.i.h.bf16 %v2853_v44  ;;  %v2106_v2 = vunpack.i.l.bf16 %v2853_v44  ;;  %v1683_v1 = vrot.slane %v3052_v4, 4 }
 0x104   : > { %v1675_v8 = vrot.slane %v3049_v49, 4  ;;  %2289 = vrot.lane.b32.xlu0 %v2288_v11, %s2374_s7  ;;  %v636_v35 = vsel %vm164_vm0, %v635_v3, %v594_v62  ;;  %v644_v50 = vsel %vm164_vm0, %v643_v15, %v606_v27  ;;  %v638_v39 = vsel %vm164_vm0, %v618_v7, %v637_v12 }
 0x105   : > { %v646_v43 = vsel %vm164_vm0, %v630_v28, %v645_v5  ;;  %v2097_v59 = vunpack.i.h.bf16 %v2869_v9  ;;  %v2303_v36 = vpack.i.bf16 %v644_v50, %v636_v35  ;;  %v792_v44 = vsel %vm164_vm0, %v2767_v22, %v791_v51 }
 0x106   : > { %v800_v4 = vsel %vm164_vm0, %v3674_v33, %v799_v0  ;;  %v2096_v49 = vunpack.i.l.bf16 %v2869_v9  ;;  %v1499_v55 = vrot.slane %v3138_v24, 4  ;;  %v1491_v47 = vrot.slane %v3135_v45, 4 }
 0x107   : > { %2304 = vrot.lane.b32.xlu1 %v2303_v36, %s2375_s8  ;;  %v2308_v10 = vpack.i.bf16 %v646_v43, %v638_v39  ;;  %v1676_v32 = vsel %vm164_vm0, %v1675_v8, %v3675_v13  ;;  %v1684_v22 = vsel %vm164_vm0, %v1683_v1, %v3676_v61  ;;  %v2298_v38 = vpack.i.bf16 %v800_v4, %v792_v44  ;;  %v3680_v43 = vld [vmem:[#allocation8_spill] sm:$0xff]  ;;  %v3681_v36 = vld [vmem:[#allocation9_spill] sm:$0xff]  ;;  %v3683_v61 = vld [vmem:[#allocation7_spill] sm:$0xff] }
 0x108   : > { %v261_v9 = vsel %vm164_vm0, %v260_v58, %v3677_v60  ;;  %v269_v24 = vsel %vm164_vm0, %v268_v54, %v3678_v53  ;;  %v1153_v45 = vrot.slane %v3248_v21, 4  ;;  %v1161_v57 = vrot.slane %v3251_v6, 4 }
 0x109   : > { %2309 = vrot.lane.b32.xlu2 %v2308_v10, %s2374_s7  ;;  %v301_v14 = vsel %vm300_vm1, %v261_v9, %v2091_v52  ;;  %v306_v20 = vsel %vm300_vm1, %v269_v24, %v2092_v40  ;;  %v1492_v21 = vsel %vm164_vm0, %v1491_v47, %v3108_v23  ;;  %v1500_v41 = vsel %vm164_vm0, %v1499_v55, %v3679_v30  ;;  %v3478_v40 = vpop.permute.xlu0 %2204  ;;  %v3682_v47 = vld [vmem:[#allocation6_spill] sm:$0xff] }
 0x10a   : > { %v303_v62 = vsel %vm302_vm2, %v301_v14, %v2096_v49  ;;  %v307_v25 = vsel %vm302_vm2, %v306_v20, %v2097_v59  ;;  %v3452_v27 = vsel %vm164_vm0, %v1153_v45, %v3225_v34  ;;  %v3456_v6 = vsel %vm164_vm0, %v1161_v57, %v3213_v31 }
 0x10b   : > { %v3440_v18 = vsel %vm304_vm3, %v303_v62, %v2106_v2  ;;  %v3443_v46 = vsel %vm304_vm3, %v307_v25, %v2107_v56  ;;  %v969_v7 = vrot.slane %v3306_v26, 4  ;;  %v977_v37 = vrot.slane %v3309_v42, 4  ;;  %v2200_v42 = vpop.permute.xlu1 %2199 }
 0x10c   : > { %2299 = vrot.lane.b32.xlu0 %v2298_v38, %s2374_s7  ;;  %v631_v54 = vrot.slane %v3367_v16, 4  ;;  %v639_v34 = vrot.slane %v3370_v17, 4  ;;  %v1307_v59 = vrot.slane %v3680_v43, 4  ;;  %v1315_v44 = vrot.slane %v3681_v36, 4 }
 0x10d   : > { %v3462_v58 = vsel %vm164_vm0, %v969_v7, %v3290_v48  ;;  %v3466_v23 = vsel %vm164_vm0, %v977_v37, %v3294_v63  ;;  %v2195_v48 = vpop.permute.xlu2 %2194  ;;  %v2201_v38 = vunpack.i.l.bf16 %v2200_v42  ;;  %v2202_v53 = vunpack.i.h.bf16 %v2200_v42 }
 0x10e   : > { %v3472_v31 = vsel %vm164_vm0, %v631_v54, %v3352_v19  ;;  %v3476_v26 = vsel %vm164_vm0, %v639_v34, %v3363_v29  ;;  %v2196_v4 = vunpack.i.l.bf16 %v2195_v48  ;;  %v2197_v49 = vunpack.i.h.bf16 %v2195_v48 }
 0x10f   : > { %v1308_v10 = vsel %vm164_vm0, %v1307_v59, %v3682_v47  ;;  %v2206_v45 = vunpack.i.l.bf16 %v3478_v40  ;;  %v2207_v7 = vunpack.i.h.bf16 %v3478_v40 }
 0x110   : > { %v1347_v24 = vsel %vm300_vm1, %v1308_v10, %v2196_v4  ;;  %v3685_v4 = vld [vmem:[#allocation14_spill] sm:$0xff] }
 0x111   : > { %v1348_v34 = vsel %vm302_vm2, %v1347_v24, %v2201_v38 }
 0x113   : > { %v3480_v28 = vpop.permute.xlu1 %2214 }
 0x115   : > { %v3484_v3 = vpop.permute.xlu2 %2209 }
 0x116   : > { %v3482_v63 = vpop.permute.xlu0 %2229 }
 0x11b   : > { %v3486_v16 = vpop.permute.xlu1 %2219 }
 0x11d   : > { %v3488_v51 = vpop.permute.xlu2 %2224 }
 0x137   : > { %v2245_v35 = vpop.permute.xlu2 %2244 }
 0x138   : > { %v2247_v13 = vunpack.i.h.bf16 %v2245_v35 }
 0x13a   : > { %v1534_v30 = vsel %vm300_vm1, %v1500_v41, %v2247_v13  ;;  %v1349_v41 = vsel %vm304_vm3, %v1348_v34, %v2206_v45 }
 0x141   : > { %v2240_v19 = vpop.permute.xlu1 %2239 }
 0x142   : > { %v2242_v29 = vunpack.i.h.bf16 %v2240_v19  ;;  %v2241_v52 = vunpack.i.l.bf16 %v2240_v19 }
 0x145   : > { %v2235_v17 = vpop.permute.xlu0 %2234 }
 0x146   : > { %v2237_v0 = vunpack.i.h.bf16 %v2235_v17  ;;  %v2236_v12 = vunpack.i.l.bf16 %v2235_v17 }
 0x148   : > { %v1715_v11 = vsel %vm300_vm1, %v1676_v32, %v2236_v12  ;;  %v1718_v15 = vsel %vm300_vm1, %v1684_v22, %v2237_v0  ;;  %v2246_v32 = vunpack.i.l.bf16 %v2245_v35  ;;  %v1316_v22 = vsel %vm164_vm0, %v1315_v44, %v3683_v61  ;;  %v3686_v61 = vld [vmem:[#allocation17_spill] sm:$0xff] }
 0x149   : > { %v1716_v1 = vsel %vm302_vm2, %v1715_v11, %v2241_v52  ;;  %v1719_v8 = vsel %vm302_vm2, %v1718_v15, %v2242_v29  ;;  %v2265_v55 = vpop.permute.xlu2 %2264  ;;  %v1350_v20 = vsel %vm300_vm1, %v1316_v22, %v2197_v49  ;;  %v793_v49 = vrot.slane %v3685_v4, 4 }
 0x14a   : > { %v1531_v57 = vsel %vm300_vm1, %v1492_v21, %v2246_v32  ;;  %v1351_v19 = vsel %vm302_vm2, %v1350_v20, %v2202_v53  ;;  %v2267_v21 = vunpack.i.h.bf16 %v2265_v55  ;;  %v2266_v0 = vunpack.i.l.bf16 %v2265_v55  ;;  %v3687_v20 = vld [vmem:[#allocation18_spill] sm:$0xff] }
 0x14b   : > { %v1352_v52 = vsel %vm304_vm3, %v1351_v19, %v2207_v7  ;;  %v447_v22 = vrot.slane %v3686_v61, 4  ;;  %v2211_v53 = vunpack.i.l.bf16 %v3484_v3  ;;  %v2222_v7 = vunpack.i.h.bf16 %v3486_v16 }
 0x152   : > { %v2275_v40 = vpop.permute.xlu2 %2274 }
 0x153   : > { %v2250_v5 = vpop.permute.xlu0 %2249  ;;  %v2277_v43 = vunpack.i.h.bf16 %v2275_v40  ;;  %v2276_v59 = vunpack.i.l.bf16 %v2275_v40 }
 0x154   : > { %v2252_v56 = vunpack.i.h.bf16 %v2250_v5  ;;  %v2251_v2 = vunpack.i.l.bf16 %v2250_v5  ;;  %v2255_v33 = vpop.permute.xlu1 %2254 }
 0x155   : > { %v2257_v60 = vunpack.i.h.bf16 %v2255_v33  ;;  %v2256_v9 = vunpack.i.l.bf16 %v2255_v33  ;;  %v3684_v33 = vld [vmem:[#allocation13_spill] sm:$0xff]  ;;  %v1009_v13 = vsel %vm300_vm1, %v3462_v58, %v2276_v59  ;;  %v1012_v32 = vsel %vm300_vm1, %v3466_v23, %v2277_v43  ;;  %v3688_v23 = vld [vmem:[#allocation11_spill] sm:$0xff] }
 0x156   : > { %v1717_v50 = vsel %vm304_vm3, %v1716_v1, %v2251_v2  ;;  %v1720_v39 = vsel %vm304_vm3, %v1719_v8, %v2252_v56  ;;  %v1193_v56 = vsel %vm300_vm1, %v3452_v27, %v2266_v0  ;;  %v1196_v2 = vsel %vm300_vm1, %v3456_v6, %v2267_v21  ;;  %v3690_v21 = vld [vmem:[#allocation15_spill] sm:$0xff] }
 0x157   : > { %1757 = vmatpush.msra.mxu0 %v1717_v50  ;;  %1976 = vmatpush.msra.mxu2 %v1717_v50  ;;  %v1532_v37 = vsel %vm302_vm2, %v1531_v57, %v2256_v9  ;;  %v1535_v54 = vsel %vm302_vm2, %v1534_v30, %v2257_v60  ;;  %v785_v6 = vrot.slane %v3684_v33, 4  ;;  %v2212_v9 = vunpack.i.h.bf16 %v3484_v3  ;;  %v3689_v57 = vld [vmem:[#allocation12_spill] sm:$0xff] }
 0x158   : > { %1780 = vmatpush.msra.mxu1 %v1720_v39  ;;  %1985 = vmatpush.msra.mxu3 %v1720_v39  ;;  %v455_v58 = vrot.slane %v3687_v20, 4  ;;  %v794_v30 = vsel %vm164_vm0, %v793_v49, %v3689_v57  ;;  %v448_v0 = vsel %vm164_vm0, %v447_v22, %v3690_v21  ;;  %v1724_v49 = vld [vmem:[%s3614_s1 + $0x8] sm:$0xff] }
 0x159   : > { %v828_v19 = vsel %vm300_vm1, %v794_v30, %v2212_v9 }
 0x15b   : > { %v2295_v36 = vpop.permute.xlu2 %2294 }
 0x15c   : > { %v2296_v3 = vunpack.i.l.bf16 %v2295_v36  ;;  %v2297_v34 = vunpack.i.h.bf16 %v2295_v36  ;;  %v2231_v36 = vunpack.i.l.bf16 %v3482_v63 }
 0x163   : > { %v2310_v40 = vpop.permute.xlu2 %2309 }
 0x164   : > { %v2312_v59 = vunpack.i.h.bf16 %v2310_v40 }
 0x165   : > { %v2260_v14 = vpop.permute.xlu0 %2259 }
 0x166   : > { %v2262_v62 = vunpack.i.h.bf16 %v2260_v14  ;;  %v2261_v25 = vunpack.i.l.bf16 %v2260_v14 }
 0x168   : > { %v1533_v48 = vsel %vm304_vm3, %v1532_v37, %v2261_v25  ;;  %v1536_v17 = vsel %vm304_vm3, %v1535_v54, %v2262_v62  ;;  %v2221_v62 = vunpack.i.l.bf16 %v3486_v16  ;;  %v786_v25 = vsel %vm164_vm0, %v785_v6, %v3688_v23 }
 0x169   : > { %v2270_v42 = vpop.permute.xlu1 %2269  ;;  %1758 = vmatpush.msra.mxu0 %v1533_v48  ;;  %1977 = vmatpush.msra.mxu2 %v1533_v48  ;;  %v2217_v37 = vunpack.i.h.bf16 %v3480_v28  ;;  %v2216_v54 = vunpack.i.l.bf16 %v3480_v28  ;;  %v2226_v16 = vunpack.i.l.bf16 %v3488_v51 }
 0x16a   : > { %1781 = vmatpush.msra.mxu1 %v1536_v17  ;;  %1986 = vmatpush.msra.mxu3 %v1536_v17  ;;  %v2272_v12 = vunpack.i.h.bf16 %v2270_v42  ;;  %v2271_v29 = vunpack.i.l.bf16 %v2270_v42  ;;  %v825_v17 = vsel %vm300_vm1, %v786_v25, %v2211_v53 }
 0x16b   : > { %1759 = vmatpush.msra.mxu0 %v1349_v41  ;;  %1978 = vmatpush.msra.mxu2 %v1349_v41  ;;  %v2227_v41 = vunpack.i.h.bf16 %v3488_v51 }
 0x16c   : > { %1782 = vmatpush.msra.mxu1 %v1352_v52  ;;  %1987 = vmatpush.msra.mxu3 %v1352_v52  ;;  %v1194_v1 = vsel %vm302_vm2, %v1193_v56, %v2271_v29  ;;  %v1197_v8 = vsel %vm302_vm2, %v1196_v2, %v2272_v12  ;;  %v487_v29 = vsel %vm300_vm1, %v448_v0, %v2221_v62  ;;  %v3691_v52 = vld [vmem:[#allocation16_spill] sm:$0xff] }
 0x16d   : > { %v456_v28 = vsel %vm164_vm0, %v455_v58, %v3691_v52  ;;  %v826_v2 = vsel %vm302_vm2, %v825_v17, %v2216_v54 }
 0x16e   : > { %v2280_v11 = vpop.permute.xlu0 %2279  ;;  %v490_v56 = vsel %vm300_vm1, %v456_v28, %v2222_v7 }
 0x16f   : > { %v2282_v15 = vunpack.i.h.bf16 %v2280_v11  ;;  %v2281_v5 = vunpack.i.l.bf16 %v2280_v11 }
 0x171   : > { %v2285_v35 = vpop.permute.xlu1 %2284  ;;  %v1195_v50 = vsel %vm304_vm3, %v1194_v1, %v2281_v5  ;;  %v1198_v39 = vsel %vm304_vm3, %v1197_v8, %v2282_v15  ;;  %v671_v5 = vsel %vm300_vm1, %v3472_v31, %v2296_v3  ;;  %v829_v1 = vsel %vm302_vm2, %v828_v19, %v2217_v37 }
 0x172   : > { %1760 = vmatpush.msra.mxu0 %v1195_v50  ;;  %1979 = vmatpush.msra.mxu2 %v1195_v50  ;;  %v2287_v27 = vunpack.i.h.bf16 %v2285_v35  ;;  %v2286_v44 = vunpack.i.l.bf16 %v2285_v35  ;;  %v674_v8 = vsel %vm300_vm1, %v3476_v26, %v2297_v34  ;;  %v2311_v35 = vunpack.i.l.bf16 %v2310_v40 }
 0x173   : > { %1783 = vmatpush.msra.mxu1 %v1198_v39  ;;  %1988 = vmatpush.msra.mxu3 %v1198_v39  ;;  %v488_v31 = vsel %vm302_vm2, %v487_v29, %v2226_v16  ;;  %v491_v26 = vsel %vm302_vm2, %v490_v56, %v2227_v41 }
 0x174   : > { %v1010_v38 = vsel %vm302_vm2, %v1009_v13, %v2286_v44  ;;  %v1013_v60 = vsel %vm302_vm2, %v1012_v32, %v2287_v27  ;;  %v2232_v44 = vunpack.i.h.bf16 %v3482_v63  ;;  %v489_v6 = vsel %vm304_vm3, %v488_v31, %v2231_v36  ;;  %v1723_v63 = vld [vmem:[%s3614_s1] sm:$0xff] }
 0x176   : > { %v2290_v55 = vpop.permute.xlu0 %2289  ;;  %v492_v4 = vsel %vm304_vm3, %v491_v26, %v2232_v44 }
 0x177   : > { %v2292_v47 = vunpack.i.h.bf16 %v2290_v55  ;;  %v2291_v10 = vunpack.i.l.bf16 %v2290_v55 }
 0x179   : > { %v2305_v24 = vpop.permute.xlu1 %2304  ;;  %v1011_v45 = vsel %vm304_vm3, %v1010_v38, %v2291_v10  ;;  %v1014_v14 = vsel %vm304_vm3, %v1013_v60, %v2292_v47 }
 0x17a   : > { %1761 = vmatpush.msra.mxu0 %v1011_v45  ;;  %1980 = vmatpush.msra.mxu2 %v1011_v45  ;;  %v2306_v42 = vunpack.i.l.bf16 %v2305_v24  ;;  %v2307_v48 = vunpack.i.h.bf16 %v2305_v24 }
 0x17b   : > { %1784 = vmatpush.msra.mxu1 %v1014_v14  ;;  %1989 = vmatpush.msra.mxu3 %v1014_v14 }
 0x17c   : > { %v672_v51 = vsel %vm302_vm2, %v671_v5, %v2306_v42  ;;  %v675_v43 = vsel %vm302_vm2, %v674_v8, %v2307_v48 }
 0x17d   : > { %v673_v27 = vsel %vm304_vm3, %v672_v51, %v2311_v35  ;;  %v676_v33 = vsel %vm304_vm3, %v675_v43, %v2312_v59 }
 0x17e   : > { %v2300_v12 = vpop.permute.xlu0 %2299 }
 0x17f   : > { %v2302_v11 = vunpack.i.h.bf16 %v2300_v12  ;;  %v2301_v15 = vunpack.i.l.bf16 %v2300_v12 }
 0x181   : > { %v827_v50 = vsel %vm304_vm3, %v826_v2, %v2301_v15  ;;  %v830_v39 = vsel %vm304_vm3, %v829_v1, %v2302_v11 }
 0x182   : > { %1762 = vmatpush.msra.mxu0 %v827_v50  ;;  %1981 = vmatpush.msra.mxu2 %v827_v50 }
 0x183   : > { %1785 = vmatpush.msra.mxu1 %v830_v39  ;;  %1990 = vmatpush.msra.mxu3 %v830_v39 }
 0x184   : > { %1763 = vmatpush.msra.mxu0 %v673_v27  ;;  %1982 = vmatpush.msra.mxu2 %v673_v27 }
 0x185   : > { %1786 = vmatpush.msra.mxu1 %v676_v33  ;;  %1991 = vmatpush.msra.mxu3 %v676_v33 }
 0x186   : > { %1764 = vmatpush.msra.mxu0 %v489_v6  ;;  %1983 = vmatpush.msra.mxu2 %v489_v6 }
 0x187   : > { %1787 = vmatpush.msra.mxu1 %v492_v4  ;;  %1992 = vmatpush.msra.mxu3 %v492_v4 }
 0x188   : > { %1765 = vmatpush.msra.mxu0 %v3440_v18  ;;  %1984 = vmatpush.msra.mxu2 %v3440_v18 }
 0x189   : > { %1788 = vmatpush.msra.mxu1 %v3443_v46  ;;  %1993 = vmatpush.msra.mxu3 %v3443_v46 }
 0x18a   : > { %1967 = vmatmul.msk.f32.vlgmr.msra.gmra.mxu2 %vm1743_vm4, %v1724_v49  ;;  %1969 = vmatmul.msk.f32.vlgmr.msra.gmra.mxu3 %vm1743_vm4, %v1724_v49 }
 0x18b   : > { %1966 = vmatmul.msk.f32.vlgmr.msra.gmra.mxu0 %vm1743_vm4, %v1723_v63  ;;  %1968 = vmatmul.msk.f32.vlgmr.msra.gmra.mxu1 %vm1743_vm4, %v1723_v63 }
 0x208   : > { %v1767_v55 = vpop.f32.mrf.mxu0  ;;  %v1790_v47 = vpop.f32.mrf.mxu1 }
 0x209   : > { %1796 = vst [vmem:[%s146_s26] sm:$0xff] %v1767_v55 }
 0x20a   : > { %1797 = vst [vmem:[%s146_s26 + $0x8] sm:$0xff] %v1790_v47 }
 0x20b   : > { %1806 = sbr.rel (!%p2437_p5) target bundleno = 536 (0x218), region = 32 }
 0x20d   : > { %v1770_v18 = vpop.f32.mrf.mxu2  ;;  %v1793_v10 = vpop.f32.mrf.mxu3 }
 0x20e   : > { %1798 = vst [vmem:[%s146_s26 + $0x10] sm:$0xff] %v1770_v18 }
 0x20f   : > { %1799 = vst [vmem:[%s146_s26 + $0x18] sm:$0xff] %v1793_v10 }
 0x210   : > { %v1824_v46 = vld [vmem:[%s146_s26] sm:$0xff] }
 0x211   : > { %v1826_v13 = vld [vmem:[%s146_s26 + $0x8] sm:$0xff]  ;;  %1825 = vst [vmem:[%s1811_s4] sm:$0xff] %v1824_v46 }
 0x212   : > { %1827 = vst [vmem:[%s1811_s4 + $0x8] sm:$0xff] %v1826_v13 }
 0x215   : > { %v1828_v32 = vld [vmem:[%s146_s26 + $0x10] sm:$0xff] }
 0x216   : > { %v1830_v61 = vld [vmem:[%s146_s26 + $0x18] sm:$0xff]  ;;  %1829 = vst [vmem:[%s1811_s4 + $0x20] sm:$0xff] %v1828_v32 }
 0x217   : > { %1831 = vst [vmem:[%s1811_s4 + $0x28] sm:$0xff] %v1830_v61 }
 0x218 PF: > { %s12_s15 = sadd.s32 1, %s2367_s15   ;;  %s3692_s9 = smov %s2347_s10 }
 0x219   : > { %p9_p10 = scmp.ge.s32.totalorder %s12_s15, 6   ;;  %s3693_s10 = smov %s2448_s24 }
 0x21a   : > { %s3694_s11 = smov %s2359_s13  ;;  %s3695_s12 = smov %s2363_s14 }
 0x21b   : > { %s3696_s13 = smov %s3699_s16  ;;  %s3697_s14 = smov %s3703_s17 }
 0x21c   :  { %11 = sbr.rel (!%p9_p10) target bundleno = 4 (0x4), region = 84 }

</bundles_post_ra>
